<compile_context>
chip_gen: v5e
topology: v5e:2x2
jax: 0.10.0
libtpu: 0.0.40
codegen_flags: <defaults>
</compile_context>

<pallas_src>
import math

import jax
import jax.numpy as jnp
from jax.experimental import pallas as pl
from jax.experimental.pallas import tpu as pltpu

# Lane-aligned padded hidden sizes (original: 400, 200). Padded rows/cols are
# zero so padded lanes never leak into real outputs.
H1 = 512
H2 = 256
_A_SLOT = 128                       # packed-bias slot reserved for dim_a (<=128)
_B_ROWS = H1 + H2 + _A_SLOT
_VMEM_LIMIT_BYTES = 48 * 1024 * 1024  # covers tile_b up to ~4096 on every gen


def _round_up(x, m):
    return (x + m - 1) // m * m


def actor_kernel(s_ref, w1_ref, w2_ref, w3_ref, b_ref, a_ref):
    """Transposed layout: every tensor is [features, batch_tile].

    Batch is the lane (minor) axis, so loads/stores of the big intermediates
    and of the dim_a-wide output are lane-dense (no masked partial stores).
    """
    dim_a = a_ref.shape[0]
    x = s_ref[...].astype(jnp.bfloat16)                         # [dim_s, tb]

    # Linear(dim_s -> 400 [padded 512]) + ReLU. bf16 MXU, f32 accumulate,
    # f32 bias; the *named* intermediate is cast to bf16 so any VMEM
    # round-trip/spill of the [512, tb] tensor moves half the bytes.
    h1 = jnp.dot(w1_ref[...], x, preferred_element_type=jnp.float32)
    h1 = jnp.maximum(h1 + b_ref[0:H1, :], 0.0).astype(jnp.bfloat16)

    # Linear(400 -> 200 [padded 256]) + ReLU
    h2 = jnp.dot(w2_ref[...], h1, preferred_element_type=jnp.float32)
    h2 = jnp.maximum(h2 + b_ref[H1:H1 + H2, :], 0.0).astype(jnp.bfloat16)

    # Linear(200 -> dim_a) + Tanh
    out = jnp.dot(w3_ref[...], h2, preferred_element_type=jnp.float32)
    out = out + b_ref[H1 + H2:H1 + H2 + dim_a, :]
    a_ref[...] = jnp.tanh(out).astype(a_ref.dtype)


def _choose_tile_b(batch, tile_b_max):
    """Adaptive batch tile: balanced across grid steps so padding waste is
    bounded by the alignment (8 or 128 rows), not by a fixed tile size."""
    tile_b_max = max(128, _round_up(tile_b_max, 128))
    if batch <= 128:
        # Single grid step; the block spans the full (padded) batch dim so it
        # only needs sublane (8) alignment.
        return _round_up(max(batch, 1), 8)
    # Prefer >=2 grid steps for training-size batches so CORE_PARALLEL has
    # work for both v7x TensorCores.
    min_tiles = 2 if batch >= 1024 else 1
    n_tiles = max(min_tiles, pl.cdiv(batch, tile_b_max))
    return min(tile_b_max, _round_up(pl.cdiv(batch, n_tiles), 128))


def actor_forward(s, kparams, *, tile_b_max=2048):
    """s: [batch, dim_s] float32. kparams: packed/padded params (pack_params).
    Returns [batch, dim_a] float32 actions."""
    w1t, w2t, w3t, b_all = (kparams["w1t"], kparams["w2t"],
                            kparams["w3t"], kparams["b_all"])
    batch, dim_s = s.shape
    dim_a = w3t.shape[0]
    assert dim_a <= _A_SLOT, f"dim_a={dim_a} exceeds packed-bias slot {_A_SLOT}"
    assert w1t.shape == (H1, dim_s) and w2t.shape == (H2, H1)
    assert b_all.shape == (_B_ROWS, 1)

    tile_b = _choose_tile_b(batch, tile_b_max)
    padded_batch = _round_up(batch, tile_b)
    n_tiles = padded_batch // tile_b

    if padded_batch != batch:
        s = jnp.pad(s, ((0, padded_batch - batch), (0, 0)))
    # Layout plumbing (outside the kernel): batch becomes the lane axis.
    s_t = s.T                                                   # [dim_s, padded_batch]

    cost = pl.CostEstimate(
        flops=2 * padded_batch * (dim_s * H1 + H1 * H2 + H2 * dim_a),
        transcendentals=padded_batch * dim_a,                   # tanh
        bytes_accessed=(s_t.size * 4 + w1t.size * 2 + w2t.size * 2
                        + w3t.size * 2 + b_all.size * 4
                        + dim_a * padded_batch * 4))

    def run(batch_axis_semantics):
        return pl.pallas_call(
            actor_kernel,
            out_shape=jax.ShapeDtypeStruct((dim_a, padded_batch), jnp.float32),
            grid=(n_tiles,),
            in_specs=[
                pl.BlockSpec((dim_s, tile_b), lambda i: (0, i)),   # state tile
                pl.BlockSpec((H1, dim_s), lambda i: (0, 0)),       # w1^T (VMEM-resident)
                pl.BlockSpec((H2, H1), lambda i: (0, 0)),          # w2^T (VMEM-resident)
                pl.BlockSpec((dim_a, H2), lambda i: (0, 0)),       # w3^T (VMEM-resident)
                pl.BlockSpec((_B_ROWS, 1), lambda i: (0, 0)),      # packed bias column
            ],
            out_specs=pl.BlockSpec((dim_a, tile_b), lambda i: (0, i)),
            compiler_params=pltpu.CompilerParams(
                dimension_semantics=(batch_axis_semantics,),
                vmem_limit_bytes=_VMEM_LIMIT_BYTES),
            cost_estimate=cost,
        )(s_t, w1t, w2t, w3t, b_all)

    if n_tiles >= 2:
        try:
            # True per-TensorCore sharding of the batch axis on v7x.
            out_t = run(pltpu.CORE_PARALLEL)
        except Exception:   # chip/toolchain without CORE_PARALLEL support
            out_t = run(pltpu.PARALLEL)
    else:
        out_t = run(pltpu.PARALLEL)

    return out_t[:, :batch].T                                   # [batch, dim_a]


def init_params(key, dim_s, dim_a):
    """f32, unpadded params matching PyTorch nn.Linear default init
    U(-1/sqrt(fan_in), 1/sqrt(fan_in)); weights stored as [fan_in, fan_out]."""
    ks = jax.random.split(key, 6)

    def linear(kw, kb, fan_in, fan_out):
        bound = 1.0 / math.sqrt(fan_in)
        w = jax.random.uniform(kw, (fan_in, fan_out), jnp.float32, -bound, bound)
        b = jax.random.uniform(kb, (fan_out,), jnp.float32, -bound, bound)
        return w, b

    w1, b1 = linear(ks[0], ks[1], dim_s, 400)
    w2, b2 = linear(ks[2], ks[3], 400, 200)
    w3, b3 = linear(ks[4], ks[5], 200, dim_a)
    return {"w1": w1, "b1": b1, "w2": w2, "b2": b2, "w3": w3, "b3": b3}


def pack_params(params, dim_a):
    """Transpose weights to [fan_out, fan_in], zero-pad hidden dims to the
    lane-aligned sizes, cast to bf16 (intentional accuracy trade-off vs. f32
    PyTorch weights), and pack the three biases into one column buffer
    (single DMA, broadcast along the batch/lane axis in-kernel)."""
    assert dim_a <= _A_SLOT, f"dim_a={dim_a} exceeds packed-bias slot {_A_SLOT}"
    w1t = jnp.pad(params["w1"].T, ((0, H1 - 400), (0, 0))).astype(jnp.bfloat16)
    w2t = jnp.pad(params["w2"].T, ((0, H2 - 200), (0, H1 - 400))).astype(jnp.bfloat16)
    w3t = jnp.pad(params["w3"].T, ((0, 0), (0, H2 - 200))).astype(jnp.bfloat16)
    b_all = jnp.zeros((_B_ROWS, 1), jnp.float32)
    b_all = b_all.at[0:400, 0].set(params["b1"])
    b_all = b_all.at[H1:H1 + 200, 0].set(params["b2"])
    b_all = b_all.at[H1 + H2:H1 + H2 + dim_a, 0].set(params["b3"])
    return {"w1t": w1t, "w2t": w2t, "w3t": w3t, "b_all": b_all}


def actor_reference(s, params):
    """Pure-f32 reference matching the PyTorch module semantics."""
    h1 = jnp.maximum(s @ params["w1"] + params["b1"], 0.0)
    h2 = jnp.maximum(h1 @ params["w2"] + params["b2"], 0.0)
    return jnp.tanh(h2 @ params["w3"] + params["b3"])


if __name__ == "__main__":
    key = jax.random.PRNGKey(0)
    k_param, k_state = jax.random.split(key)

    batch, dim_s, dim_a = 8, 8, 4
    params = init_params(k_param, dim_s, dim_a)
    kparams = pack_params(params, dim_a)
    s = jax.random.normal(k_state, (batch, dim_s), jnp.float32)

    a = jax.block_until_ready(actor_forward(s, kparams))
    a_ref = actor_reference(s, params)

    assert a.shape == (batch, dim_a)
    # bf16 weights/activations on the MXU vs. the f32 reference => loose tolerance.
    max_err = float(jnp.max(jnp.abs(a - a_ref)))
    assert jnp.allclose(a, a_ref, atol=2e-2, rtol=2e-2), max_err
    print("KERNEL_OK")
</pallas_src>

<mosaic_0001>
module attributes {stable_mosaic.version = 11 : i64} {
  func.func @actor_kernel(%arg0: i32, %arg1: memref<8x8xf32, #tpu.memory_space<vmem>>, %arg2: memref<512x8xbf16, #tpu.memory_space<vmem>>, %arg3: memref<256x512xbf16, #tpu.memory_space<vmem>>, %arg4: memref<4x256xbf16, #tpu.memory_space<vmem>>, %arg5: memref<896x1xf32, #tpu.memory_space<vmem>>, %arg6: memref<4x8xf32, #tpu.memory_space<vmem>>) attributes {dimension_semantics = [#tpu.dimension_semantics<parallel>], iteration_bounds = array<i64: 1>, scalar_prefetch = 0 : i64, scratch_operands = 0 : i64, tpu.core_type = #tpu.core_type<tc>, window_params = [{transform_indices = @transform_0, window_bounds = array<i64: 8, 8>}, {pipeline_mode = #tpu.pipeline_mode<synchronous>, transform_indices = @transform_1, window_bounds = array<i64: 512, 8>}, {pipeline_mode = #tpu.pipeline_mode<synchronous>, transform_indices = @transform_2, window_bounds = array<i64: 256, 512>}, {pipeline_mode = #tpu.pipeline_mode<synchronous>, transform_indices = @transform_3, window_bounds = array<i64: 4, 256>}, {pipeline_mode = #tpu.pipeline_mode<synchronous>, transform_indices = @transform_4, window_bounds = array<i64: 896, 1>}, {transform_indices = @transform_5, window_bounds = array<i64: 4, 8>}]} {
    %c0 = arith.constant 0 : index
    %c0_0 = arith.constant 0 : index
    %0 = vector.load %arg1[%c0, %c0_0] : memref<8x8xf32, #tpu.memory_space<vmem>>, vector<8x8xf32>
    %1 = arith.truncf %0 : vector<8x8xf32> to vector<8x8xbf16>
    %c0_1 = arith.constant 0 : index
    %c0_2 = arith.constant 0 : index
    %2 = vector.load %arg2[%c0_1, %c0_2] : memref<512x8xbf16, #tpu.memory_space<vmem>>, vector<512x8xbf16>
    %cst = arith.constant dense<0.000000e+00> : vector<512x8xf32>
    %3 = tpu.matmul %2, %1, %cst {dimension_numbers = #tpu.dot_dimension_numbers<[1], [0], [0], [1], [0, 0, 1, 1], [], []>} : vector<512x8xbf16>, vector<8x8xbf16>, vector<512x8xf32> -> vector<512x8xf32>
    %c0_3 = arith.constant 0 : index
    %c0_4 = arith.constant 0 : index
    %4 = vector.load %arg5[%c0_3, %c0_4] : memref<896x1xf32, #tpu.memory_space<vmem>>, vector<512x1xf32>
    %5 = vector.broadcast %4 : vector<512x1xf32> to vector<512x8xf32>
    %6 = arith.addf %3, %5 : vector<512x8xf32>
    %cst_5 = arith.constant 0.000000e+00 : f32
    %7 = vector.broadcast %cst_5 : f32 to vector<512x8xf32>
    %8 = arith.maximumf %6, %7 : vector<512x8xf32>
    %9 = arith.truncf %8 : vector<512x8xf32> to vector<512x8xbf16>
    %c0_6 = arith.constant 0 : index
    %c0_7 = arith.constant 0 : index
    %10 = vector.load %arg3[%c0_6, %c0_7] : memref<256x512xbf16, #tpu.memory_space<vmem>>, vector<256x512xbf16>
    %cst_8 = arith.constant dense<0.000000e+00> : vector<256x8xf32>
    %11 = tpu.matmul %10, %9, %cst_8 {dimension_numbers = #tpu.dot_dimension_numbers<[1], [0], [0], [1], [0, 0, 1, 1], [], []>} : vector<256x512xbf16>, vector<512x8xbf16>, vector<256x8xf32> -> vector<256x8xf32>
    %c512 = arith.constant 512 : index
    %c0_9 = arith.constant 0 : index
    %12 = vector.load %arg5[%c512, %c0_9] : memref<896x1xf32, #tpu.memory_space<vmem>>, vector<256x1xf32>
    %13 = vector.broadcast %12 : vector<256x1xf32> to vector<256x8xf32>
    %14 = arith.addf %11, %13 : vector<256x8xf32>
    %cst_10 = arith.constant 0.000000e+00 : f32
    %15 = vector.broadcast %cst_10 : f32 to vector<256x8xf32>
    %16 = arith.maximumf %14, %15 : vector<256x8xf32>
    %17 = arith.truncf %16 : vector<256x8xf32> to vector<256x8xbf16>
    %c0_11 = arith.constant 0 : index
    %c0_12 = arith.constant 0 : index
    %18 = vector.load %arg4[%c0_11, %c0_12] : memref<4x256xbf16, #tpu.memory_space<vmem>>, vector<4x256xbf16>
    %cst_13 = arith.constant dense<0.000000e+00> : vector<4x8xf32>
    %19 = tpu.matmul %18, %17, %cst_13 {dimension_numbers = #tpu.dot_dimension_numbers<[1], [0], [0], [1], [0, 0, 1, 1], [], []>} : vector<4x256xbf16>, vector<256x8xbf16>, vector<4x8xf32> -> vector<4x8xf32>
    %c768 = arith.constant 768 : index
    %c0_14 = arith.constant 0 : index
    %20 = vector.load %arg5[%c768, %c0_14] : memref<896x1xf32, #tpu.memory_space<vmem>>, vector<4x1xf32>
    %21 = vector.broadcast %20 : vector<4x1xf32> to vector<4x8xf32>
    %22 = arith.addf %19, %21 : vector<4x8xf32>
    %23 = math.tanh %22 : vector<4x8xf32>
    %c0_15 = arith.constant 0 : index
    %c0_16 = arith.constant 0 : index
    %24 = vector.load %arg6[%c0_15, %c0_16] : memref<4x8xf32, #tpu.memory_space<vmem>>, vector<4x8xf32>
    tpu.vector_store %arg6[%c0_15, %c0_16], %23 {strides = array<i32>} : memref<4x8xf32, #tpu.memory_space<vmem>>, vector<4x8xf32>,
    return
  }
  func.func @transform_0(%arg0: i32) -> (i32, i32) {
    %c0_i32 = arith.constant 0 : i32
    %c0_i32_0 = arith.constant 0 : i32
    return %c0_i32, %arg0 : i32, i32
  }
  func.func @transform_1(%arg0: i32) -> (i32, i32) {
    %c0_i32 = arith.constant 0 : i32
    %c0_i32_0 = arith.constant 0 : i32
    %c0_i32_1 = arith.constant 0 : i32
    return %c0_i32, %c0_i32_0 : i32, i32
  }
  func.func @transform_2(%arg0: i32) -> (i32, i32) {
    %c0_i32 = arith.constant 0 : i32
    %c0_i32_0 = arith.constant 0 : i32
    %c0_i32_1 = arith.constant 0 : i32
    return %c0_i32, %c0_i32_0 : i32, i32
  }
  func.func @transform_3(%arg0: i32) -> (i32, i32) {
    %c0_i32 = arith.constant 0 : i32
    %c0_i32_0 = arith.constant 0 : i32
    %c0_i32_1 = arith.constant 0 : i32
    return %c0_i32, %c0_i32_0 : i32, i32
  }
  func.func @transform_4(%arg0: i32) -> (i32, i32) {
    %c0_i32 = arith.constant 0 : i32
    %c0_i32_0 = arith.constant 0 : i32
    %c0_i32_1 = arith.constant 0 : i32
    return %c0_i32, %c0_i32_0 : i32, i32
  }
  func.func @transform_5(%arg0: i32) -> (i32, i32) {
    %c0_i32 = arith.constant 0 : i32
    %c0_i32_0 = arith.constant 0 : i32
    return %c0_i32, %arg0 : i32, i32
  }
}

</mosaic_0001>

<bundles_post_ra>
// kernel: tpu_custom_call.1
= control target key start
LH: loop header
LB: loop body
LE: loop exit
PB: predicated region body
PF: predicated region fallthrough
CT: control target
= control target key end

     0   :  { %vm729_vm0 = vcmask 1043456   ;;  %v2590_v3 = vmov 0   ;;  %vm632_vm1 = vcmask 64512   ;;  %s3940_s0 = inlined_call_operand.vmem [shape: f32[8,8], index: 0, kind: input, shape index: {}]   ;;  %s3941_s1 = inlined_call_operand.vmem [shape: bf16[512,8], index: 1, kind: input, shape index: {}]   ;;  %s3942_s2 = inlined_call_operand.vmem [shape: bf16[256,512], index: 2, kind: input, shape index: {}]   ;;  %s3943_s3 = inlined_call_operand.vmem [shape: bf16[4,256], index: 3, kind: input, shape index: {}]   ;;  %s3944_s4 = inlined_call_operand.vmem [shape: f32[896,1], index: 4, kind: input, shape index: {}]   ;;  %s3945_s5 = inlined_call_operand.hbm [shape: f32[4,8], index: 5, kind: output, shape index: {}]  }
   0x1   :  { %v102_v0 = vld [vmem:[%s3944_s4 + $0x70] sm:$0xff]  ;;  %v100_v1 = vld [vmem:[%s3944_s4 + $0x60] sm:$0xff]  ;;  %2560 = vset.pattern.permute.xlu1 %v2590_v3  ;;  %2559 = vset.pattern.permute.xlu0 %v2590_v3 }
   0x2   :  { %v22_v2 = vld [vmem:[%s3940_s0] sm:$0xff]  ;;  %224 = vperm.xlu0 %2559, %v102_v0   ;;  %214 = vperm.xlu1 %2560, %v100_v1   ;;  %v98_v5 = vld [vmem:[%s3944_s4 + $0x50] sm:$0xff] }
   0x3   :  { %v23_v4 = vpack.c.bf16 %v22_v2, %v22_v2  ;;  %v2452_v7 = vld [vmem:[%s3941_s1] sm:$0xff]  ;;  %2561 = vset.pattern.permute.xlu2 %v2590_v3 }
   0x4   :  { %204 = vperm.xlu2 %2561, %v98_v5  }
   0x5   :  { %v731_v6 = vsel %vm729_vm0, %v23_v4, 0 }
   0x6   :  { %740 = vmatpush.bf16.msra.mxu0 %v731_v6  ;;  %2548 = vmatpush.bf16.msra.mxu3 %v731_v6 }
   0x7   :  { %10 = vsyncpa [#allocation3], 0  ;;  %v103_v8 = vld [vmem:[%s3944_s4 + $0x78] sm:$0xff]  ;;  %v101_v9 = vld [vmem:[%s3944_s4 + $0x68] sm:$0xff]  ;;  %vm2018_vm2 = vcmask 60416  }
   0x8   :  { %v99_v10 = vld [vmem:[%s3944_s4 + $0x58] sm:$0xff]  ;;  %v97_v11 = vld [vmem:[%s3944_s4 + $0x48] sm:$0xff]  ;;  %v96_v12 = vld [vmem:[%s3944_s4 + $0x40] sm:$0xff] }
   0x9   :  { %2164 = vmatmul.msk.bf16.vlgmr.msra.gmra.mxu0 %vm632_vm1, %v2452_v7  ;;  %v94_v13 = vld [vmem:[%s3944_s4 + $0x30] sm:$0xff]  ;;  %v2453_v14 = vld [vmem:[%s3941_s1 + $0x8] sm:$0xff]  ;;  %v95_v15 = vld [vmem:[%s3944_s4 + $0x38] sm:$0xff] }
   0xa   :  { %229 = vperm.xlu0 %2559, %v103_v8   ;;  %219 = vperm.xlu1 %2560, %v101_v9   ;;  %v92_v16 = vld [vmem:[%s3944_s4 + $0x20] sm:$0xff]  ;;  %v93_v17 = vld [vmem:[%s3944_s4 + $0x28] sm:$0xff]  ;;  %v91_v18 = vld [vmem:[%s3944_s4 + $0x18] sm:$0xff] }
   0xb   :  { %v90_v19 = vld [vmem:[%s3944_s4 + $0x10] sm:$0xff]  ;;  %v88_v20 = vld [vmem:[%s3944_s4] sm:$0xff]  ;;  %v89_v23 = vld [vmem:[%s3944_s4 + $0x8] sm:$0xff] }
   0xc   :  { %209 = vperm.xlu2 %2561, %v99_v10   ;;  %v2454_v21 = vld [vmem:[%s3941_s1 + $0x10] sm:$0xff]  ;;  %v119_v24 = vld [vmem:[%s3944_s4 + $0xf8] sm:$0xff]  ;;  %v116_v27 = vld [vmem:[%s3944_s4 + $0xe0] sm:$0xff] }
   0xd   :  { %v118_v22 = vld [vmem:[%s3944_s4 + $0xf0] sm:$0xff]  ;;  %v135_v25 = vld [vmem:[%s3944_s4 + $0x178] sm:$0xff]  ;;  %v132_v29 = vld [vmem:[%s3944_s4 + $0x160] sm:$0xff] }
   0xe   :  { %v134_v26 = vld [vmem:[%s3944_s4 + $0x170] sm:$0xff]  ;;  %v2455_v28 = vld [vmem:[%s3941_s1 + $0x18] sm:$0xff]  ;;  %v117_v30 = vld [vmem:[%s3944_s4 + $0xe8] sm:$0xff] }
   0xf   :  { %v133_v31 = vld [vmem:[%s3944_s4 + $0x168] sm:$0xff]  ;;  %v115_v32 = vld [vmem:[%s3944_s4 + $0xd8] sm:$0xff]  ;;  %v114_v33 = vld [vmem:[%s3944_s4 + $0xd0] sm:$0xff] }
  0x10   :  { %v130_v34 = vld [vmem:[%s3944_s4 + $0x150] sm:$0xff]  ;;  %v2456_v35 = vld [vmem:[%s3941_s1 + $0x20] sm:$0xff]  ;;  %v131_v37 = vld [vmem:[%s3944_s4 + $0x158] sm:$0xff] }
  0x11   :  { %v150_v36 = vld [vmem:[%s3944_s4 + $0x1f0] sm:$0xff]  ;;  %v151_v38 = vld [vmem:[%s3944_s4 + $0x1f8] sm:$0xff]  ;;  %v113_v39 = vld [vmem:[%s3944_s4 + $0xc8] sm:$0xff] }
  0x12   :  { %199 = vperm.xlu1 %2560, %v97_v11   ;;  %194 = vperm.xlu0 %2559, %v96_v12   ;;  %v112_v40 = vld [vmem:[%s3944_s4 + $0xc0] sm:$0xff]  ;;  %v2457_v42 = vld [vmem:[%s3941_s1 + $0x28] sm:$0xff]  ;;  %v2478_v46 = vld [vmem:[%s3941_s1 + $0xd0] sm:$0xff] }
  0x13   :  { %v128_v41 = vld [vmem:[%s3944_s4 + $0x140] sm:$0xff]  ;;  %v129_v44 = vld [vmem:[%s3944_s4 + $0x148] sm:$0xff]  ;;  %2190 = vmatmul.msk.bf16.vlgmr.msra.gmra.mxu3 %vm632_vm1, %v2478_v46  ;;  %v111_v48 = vld [vmem:[%s3944_s4 + $0xb8] sm:$0xff] }
  0x14   :  { %184 = vperm.xlu2 %2561, %v94_v13   ;;  %v148_v43 = vld [vmem:[%s3944_s4 + $0x1e0] sm:$0xff]  ;;  %v149_v45 = vld [vmem:[%s3944_s4 + $0x1e8] sm:$0xff]  ;;  %v110_v49 = vld [vmem:[%s3944_s4 + $0xb0] sm:$0xff] }
  0x15   :  { %v126_v50 = vld [vmem:[%s3944_s4 + $0x130] sm:$0xff]  ;;  %v127_v54 = vld [vmem:[%s3944_s4 + $0x138] sm:$0xff]  ;;  %v109_v57 = vld [vmem:[%s3944_s4 + $0xa8] sm:$0xff] }
  0x16   :  { %v2458_v51 = vld [vmem:[%s3941_s1 + $0x30] sm:$0xff]  ;;  %v147_v55 = vld [vmem:[%s3944_s4 + $0x1d8] sm:$0xff]  ;;  %v108_v58 = vld [vmem:[%s3944_s4 + $0xa0] sm:$0xff] }
  0x17   :  { %v146_v53 = vld [vmem:[%s3944_s4 + $0x1d0] sm:$0xff]  ;;  %v2479_v56 = vld [vmem:[%s3941_s1 + $0xd8] sm:$0xff]  ;;  %v124_v60 = vld [vmem:[%s3944_s4 + $0x120] sm:$0xff] }
  0x18   :  { %v2459_v61 = vld [vmem:[%s3941_s1 + $0x38] sm:$0xff]  ;;  %v144_v0 = vld [vmem:[%s3944_s4 + $0x1c0] sm:$0xff]  ;;  %v125_v1 = vld [vmem:[%s3944_s4 + $0x128] sm:$0xff] }
  0x19   :  { %2165 = vmatmul.msk.bf16.gmra.mxu0 %vm632_vm1, %v2453_v14  ;;  %v145_v3 = vld [vmem:[%s3944_s4 + $0x1c8] sm:$0xff]  ;;  %v2480_v6 = vld [vmem:[%s3941_s1 + $0xe0] sm:$0xff]  ;;  %v107_v7 = vld [vmem:[%s3944_s4 + $0x98] sm:$0xff] }
  0x1a   :  { %189 = vperm.xlu0 %2559, %v95_v15   ;;  %174 = vperm.xlu1 %2560, %v92_v16   ;;  %v106_v8 = vld [vmem:[%s3944_s4 + $0x90] sm:$0xff]  ;;  %v2460_v11 = vld [vmem:[%s3941_s1 + $0x40] sm:$0xff] }
  0x1b   :  { %v122_v9 = vld [vmem:[%s3944_s4 + $0x110] sm:$0xff]  ;;  %v136_v46 = vld [vmem:[%s3944_s4 + $0x180] sm:$0xff] }
  0x1c   :  { %179 = vperm.xlu2 %2561, %v93_v17   ;;  %v142_v16 = vld [vmem:[%s3944_s4 + $0x1b0] sm:$0xff]  ;;  %v123_v17 = vld [vmem:[%s3944_s4 + $0x118] sm:$0xff] }
  0x22   :  { %169 = vperm.xlu1 %2560, %v91_v18   ;;  %164 = vperm.xlu0 %2559, %v90_v19   ;;  %v143_v18 = vld [vmem:[%s3944_s4 + $0x1b8] sm:$0xff] }
  0x23   :  { %2191 = vmatmul.msk.bf16.gmra.mxu3 %vm632_vm1, %v2479_v56  ;;  %v1076_v56 = vld [vmem:[%s3944_s4 + $0x270] sm:$0xff] }
  0x24   :  { %154 = vperm.xlu2 %2561, %v88_v20  }
  0x29   :  { %2166 = vmatmul.msk.bf16.gmra.mxu0 %vm632_vm1, %v2454_v21  ;;  %v2481_v21 = vld [vmem:[%s3941_s1 + $0xe8] sm:$0xff] }
  0x2a   :  { %304 = vperm.xlu1 %2560, %v118_v22   ;;  %159 = vperm.xlu0 %2559, %v89_v23   ;;  %v105_v23 = vld [vmem:[%s3944_s4 + $0x88] sm:$0xff] }
  0x2c   :  { %309 = vperm.xlu2 %2561, %v119_v24   ;;  %v104_v24 = vld [vmem:[%s3944_s4 + $0x80] sm:$0xff] }
  0x32   :  { %389 = vperm.xlu1 %2560, %v135_v25   ;;  %384 = vperm.xlu0 %2559, %v134_v26   ;;  %v120_v25 = vld [vmem:[%s3944_s4 + $0x100] sm:$0xff]  ;;  %v2461_v26 = vld [vmem:[%s3941_s1 + $0x48] sm:$0xff] }
  0x33   :  { %2192 = vmatmul.msk.bf16.gmra.mxu3 %vm632_vm1, %v2480_v6  ;;  %v1093_v6 = vld [vmem:[%s3944_s4 + $0x2f8] sm:$0xff] }
  0x34   :  { %294 = vperm.xlu2 %2561, %v116_v27  }
  0x39   :  { %2167 = vmatmul.msk.bf16.gmra.mxu0 %vm632_vm1, %v2455_v28 }
  0x3a   :  { %374 = vperm.xlu1 %2560, %v132_v29   ;;  %299 = vperm.xlu0 %2559, %v117_v30   ;;  %v140_v30 = vld [vmem:[%s3944_s4 + $0x1a0] sm:$0xff] }
  0x3c   :  { %379 = vperm.xlu2 %2561, %v133_v31   ;;  %v121_v31 = vld [vmem:[%s3944_s4 + $0x108] sm:$0xff] }
  0x42   :  { %289 = vperm.xlu1 %2560, %v115_v32   ;;  %284 = vperm.xlu0 %2559, %v114_v33   ;;  %v141_v32 = vld [vmem:[%s3944_s4 + $0x1a8] sm:$0xff] }
  0x43   :  { %2193 = vmatmul.msk.bf16.gmra.mxu3 %vm632_vm1, %v2481_v21  ;;  %v1091_v21 = vld [vmem:[%s3944_s4 + $0x2e8] sm:$0xff] }
  0x44   :  { %364 = vperm.xlu2 %2561, %v130_v34  }
  0x49   :  { %2168 = vmatmul.msk.bf16.gmra.mxu0 %vm632_vm1, %v2456_v35 }
  0x4a   :  { %464 = vperm.xlu1 %2560, %v150_v36   ;;  %369 = vperm.xlu0 %2559, %v131_v37   ;;  %v2482_v36 = vld [vmem:[%s3941_s1 + $0xf0] sm:$0xff] }
  0x4c   :  { %469 = vperm.xlu2 %2561, %v151_v38  }
  0x52   :  { %279 = vperm.xlu1 %2560, %v113_v39   ;;  %274 = vperm.xlu0 %2559, %v112_v40  }
  0x53   :  { %2194 = vmatmul.msk.bf16.gmra.mxu3 %vm632_vm1, %v2482_v36 }
  0x54   :  { %354 = vperm.xlu2 %2561, %v128_v41  }
  0x59   :  { %2169 = vmatmul.msk.bf16.gmra.mxu0 %vm632_vm1, %v2457_v42  ;;  %v139_v42 = vld [vmem:[%s3944_s4 + $0x198] sm:$0xff] }
  0x5a   :  { %454 = vperm.xlu1 %2560, %v148_v43   ;;  %359 = vperm.xlu0 %2559, %v129_v44   ;;  %v138_v43 = vld [vmem:[%s3944_s4 + $0x190] sm:$0xff] }
  0x5c   :  { %459 = vperm.xlu2 %2561, %v149_v45  }
  0x5e   :  { %v2761_v47 = vpop.permute.xlu2 %204 }
  0x62   :  { %269 = vperm.xlu1 %2560, %v111_v48   ;;  %264 = vperm.xlu0 %2559, %v110_v49  }
  0x64   :  { %344 = vperm.xlu2 %2561, %v126_v50   ;;  %v2462_v50 = vld [vmem:[%s3941_s1 + $0x50] sm:$0xff] }
  0x66   :  { %v2775_v52 = vpop.permute.xlu2 %209 }
  0x69   :  { %2170 = vmatmul.msk.bf16.gmra.mxu0 %vm632_vm1, %v2458_v51 }
  0x6a   :  { %444 = vperm.xlu1 %2560, %v146_v53   ;;  %349 = vperm.xlu0 %2559, %v127_v54  }
  0x6c   :  { %449 = vperm.xlu2 %2561, %v147_v55  }
  0x6e   :  { %v2797_v59 = vpop.permute.xlu2 %184 }
  0x72   :  { %259 = vperm.xlu1 %2560, %v109_v57   ;;  %254 = vperm.xlu0 %2559, %v108_v58   ;;  %v137_v57 = vld [vmem:[%s3944_s4 + $0x188] sm:$0xff]  ;;  %v1077_v58 = vld [vmem:[%s3944_s4 + $0x278] sm:$0xff] }
  0x74   :  { %v2805_v62 = vpop.permute.xlu0 %224  ;;  %v2807_v63 = vpop.permute.xlu1 %214  ;;  %334 = vperm.xlu2 %2561, %v124_v60  }
  0x76   :  { %v2816_v2 = vpop.permute.xlu2 %179 }
  0x79   :  { %2171 = vmatmul.msk.bf16.gmra.mxu0 %vm632_vm1, %v2459_v61 }
  0x7a   :  { %434 = vperm.xlu1 %2560, %v144_v0   ;;  %339 = vperm.xlu0 %2559, %v125_v1   ;;  %v2483_v0 = vld [vmem:[%s3941_s1 + $0xf8] sm:$0xff] }
  0x7b   :  { %2195 = vmatmul.msk.bf16.gmra.mxu3 %vm632_vm1, %v2483_v0 }
  0x7c   :  { %v2821_v4 = vpop.permute.xlu0 %229  ;;  %v2823_v5 = vpop.permute.xlu1 %219  ;;  %439 = vperm.xlu2 %2561, %v145_v3  }
  0x7e   :  { %v155_v10 = vpop.permute.xlu2 %154 }
  0x82   :  { %249 = vperm.xlu1 %2560, %v107_v7   ;;  %244 = vperm.xlu0 %2559, %v106_v8   ;;  %v1092_v7 = vld [vmem:[%s3944_s4 + $0x2f0] sm:$0xff] }
  0x84   :  { %v2841_v12 = vpop.permute.xlu1 %199  ;;  %v2843_v13 = vpop.permute.xlu0 %194  ;;  %324 = vperm.xlu2 %2561, %v122_v9  }
  0x86   :  { %v742_v14 = vpop.f32.mrf.mxu0 }
  0x87   :  { %v743_v15 = vadd.f32 %v742_v14, %v155_v10  ;;  %v1074_v10 = vld [vmem:[%s3944_s4 + $0x260] sm:$0xff] }
  0x89   :  { %2172 = vmatmul.msk.bf16.gmra.mxu0 %vm632_vm1, %v2460_v11  ;;  %v902_v40 = vmax.f32 %v743_v15, 0.0 }
  0x8a   :  { %424 = vperm.xlu1 %2560, %v142_v16   ;;  %329 = vperm.xlu0 %2559, %v123_v17  }
  0x8c   :  { %v2855_v19 = vpop.permute.xlu0 %189  ;;  %v175_v20 = vpop.permute.xlu1 %174  ;;  %429 = vperm.xlu2 %2561, %v143_v18   ;;  %v1090_v18 = vld [vmem:[%s3944_s4 + $0x2e0] sm:$0xff] }
  0x8e   :  { %v744_v22 = vpop.f32.mrf.mxu0 }
  0x92   :  { %239 = vperm.xlu1 %2560, %v105_v23   ;;  %234 = vperm.xlu0 %2559, %v104_v24  }
  0x94   :  { %v170_v27 = vpop.permute.xlu1 %169  ;;  %v165_v28 = vpop.permute.xlu0 %164  ;;  %314 = vperm.xlu2 %2561, %v120_v25  }
  0x96   :  { %v747_v29 = vpop.f32.mrf.mxu0 }
  0x97   :  { %v748_v33 = vadd.f32 %v747_v29, %v165_v28 }
  0x99   :  { %2173 = vmatmul.msk.bf16.gmra.mxu0 %vm632_vm1, %v2461_v26  ;;  %v904_v44 = vmax.f32 %v748_v33, 0.0  ;;  %v1073_v26 = vld [vmem:[%s3944_s4 + $0x258] sm:$0xff] }
  0x9a   :  { %414 = vperm.xlu1 %2560, %v140_v30   ;;  %319 = vperm.xlu0 %2559, %v121_v31   ;;  %v1088_v30 = vld [vmem:[%s3944_s4 + $0x2d0] sm:$0xff] }
  0x9c   :  { %v2883_v34 = vpop.permute.xlu1 %304  ;;  %v160_v35 = vpop.permute.xlu0 %159  ;;  %419 = vperm.xlu2 %2561, %v141_v32  }
  0x9d   :  { %v745_v37 = vadd.f32 %v744_v22, %v160_v35  ;;  %v2957_v22 = vpop.permute.xlu2 %309 }
  0x9e   :  { %v749_v38 = vpop.f32.mrf.mxu0 }
  0x9f   :  { %v750_v39 = vadd.f32 %v749_v38, %v170_v27  ;;  %v903_v41 = vmax.f32 %v745_v37, 0.0  ;;  %v1072_v27 = vld [vmem:[%s3944_s4 + $0x250] sm:$0xff]  ;;  %v1070_v37 = vld [vmem:[%s3944_s4 + $0x240] sm:$0xff]  ;;  %v1089_v38 = vld [vmem:[%s3944_s4 + $0x2d8] sm:$0xff] }
  0xa1   :  { %v905_v45 = vmax.f32 %v750_v39, 0.0  ;;  %v2898_v48 = vpack.c.bf16 %v903_v41, %v902_v40  ;;  %v1071_v39 = vld [vmem:[%s3944_s4 + $0x248] sm:$0xff] }
  0xa2   :  { %409 = vperm.xlu1 %2560, %v139_v42   ;;  %404 = vperm.xlu0 %2559, %v138_v43  }
  0xa3   :  { %v2900_v49 = vpack.c.bf16 %v905_v45, %v904_v44  ;;  %v1087_v45 = vld [vmem:[%s3944_s4 + $0x2c8] sm:$0xff] }
  0xa4   :  { %v2905_v51 = vpop.permute.xlu1 %389  ;;  %v2907_v53 = vpop.permute.xlu0 %384  ;;  %394 = vperm.xlu2 %2561, %v136_v46   ;;  %v1086_v46 = vld [vmem:[%s3944_s4 + $0x2c0] sm:$0xff] }
  0xa5   :  { %v2982_v36 = vpop.permute.xlu2 %294 }
  0xa6   :  { %v752_v54 = vpop.f32.mrf.mxu0 }
  0xa7   :  { %v753_v55 = vadd.f32 %v752_v54, %v175_v20  ;;  %v1075_v20 = vld [vmem:[%s3944_s4 + $0x268] sm:$0xff] }
  0xa9   :  { %2174 = vmatmul.msk.bf16.gmra.mxu0 %vm632_vm1, %v2462_v50  ;;  %v906_v8 = vmax.f32 %v753_v55, 0.0  ;;  %v1068_v55 = vld [vmem:[%s3944_s4 + $0x230] sm:$0xff] }
  0xaa   :  { %1166 = vperm.xlu1 %2560, %v1076_v56   ;;  %399 = vperm.xlu0 %2559, %v137_v57  }
  0xac   :  { %v2919_v60 = vpop.permute.xlu1 %374  ;;  %v2921_v61 = vpop.permute.xlu0 %299  ;;  %1171 = vperm.xlu2 %2561, %v1077_v58  }
  0xad   :  { %v3006_v50 = vpop.permute.xlu2 %379 }
  0xae   :  { %v754_v1 = vpop.f32.mrf.mxu0 }
  0xaf   :  { %v755_v3 = vadd.f32 %v754_v1, %v2816_v2  ;;  %v2463_v2 = vld [vmem:[%s3941_s1 + $0x58] sm:$0xff]  ;;  %v1084_v1 = vld [vmem:[%s3944_s4 + $0x2b0] sm:$0xff] }
  0xb1   :  { %v907_v9 = vmax.f32 %v755_v3, 0.0  ;;  %v1069_v3 = vld [vmem:[%s3944_s4 + $0x238] sm:$0xff] }
  0xb2   :  { %1251 = vperm.xlu1 %2560, %v1093_v6   ;;  %1246 = vperm.xlu0 %2559, %v1092_v7   ;;  %v1085_v6 = vld [vmem:[%s3944_s4 + $0x2b8] sm:$0xff] }
  0xb3   :  { %v2937_v11 = vpack.c.bf16 %v907_v9, %v906_v8 }
  0xb4   :  { %v2942_v14 = vpop.permute.xlu1 %289  ;;  %v2944_v15 = vpop.permute.xlu0 %284  ;;  %1156 = vperm.xlu2 %2561, %v1074_v10  }
  0xb5   :  { %v3032_v7 = vpop.permute.xlu2 %364 }
  0xb6   :  { %v757_v16 = vpop.f32.mrf.mxu0 }
  0xb7   :  { %v758_v17 = vadd.f32 %v757_v16, %v2797_v59  ;;  %v1066_v16 = vld [vmem:[%s3944_s4 + $0x220] sm:$0xff] }
  0xb9   :  { %2175 = vmatmul.msk.bf16.gmra.mxu0 %vm632_vm1, %v2463_v2  ;;  %v908_v28 = vmax.f32 %v758_v17, 0.0  ;;  %v1067_v2 = vld [vmem:[%s3944_s4 + $0x228] sm:$0xff]  ;;  %v3044_v17 = vpop.f32.mrf.mxu3 }
  0xba   :  { %1236 = vperm.xlu1 %2560, %v1090_v18   ;;  %1161 = vperm.xlu0 %2559, %v1075_v20   ;;  %v1082_v18 = vld [vmem:[%s3944_s4 + $0x2a0] sm:$0xff]  ;;  %v2466_v20 = vld [vmem:[%s3941_s1 + $0x70] sm:$0xff] }
  0xbc   :  { %v2959_v23 = vpop.permute.xlu1 %464  ;;  %v2961_v59 = vpop.permute.xlu0 %369  ;;  %1241 = vperm.xlu2 %2561, %v1091_v21  }
  0xbd   :  { %v3052_v21 = vpop.permute.xlu2 %469 }
  0xbe   :  { %v759_v24 = vpop.f32.mrf.mxu0 }
  0xbf   :  { %v760_v25 = vadd.f32 %v759_v24, %v2855_v19  ;;  %v2464_v19 = vld [vmem:[%s3941_s1 + $0x60] sm:$0xff] }
  0xc1   :  { %v909_v29 = vmax.f32 %v760_v25, 0.0 }
  0xc2   :  { %1151 = vperm.xlu1 %2560, %v1073_v26   ;;  %1146 = vperm.xlu0 %2559, %v1072_v27   ;;  %v1064_v27 = vld [vmem:[%s3944_s4 + $0x210] sm:$0xff] }
  0xc3   :  { %v2973_v31 = vpack.c.bf16 %v909_v29, %v908_v28  ;;  %v1083_v28 = vld [vmem:[%s3944_s4 + $0x2a8] sm:$0xff]  ;;  %v3065_v29 = vpop.f32.mrf.mxu3 }
  0xc4   :  { %v2978_v32 = vpop.permute.xlu1 %279  ;;  %v2980_v33 = vpop.permute.xlu0 %274  ;;  %1226 = vperm.xlu2 %2561, %v1088_v30   ;;  %v1065_v30 = vld [vmem:[%s3944_s4 + $0x218] sm:$0xff] }
  0xc6   :  { %v762_v35 = vpop.f32.mrf.mxu0 }
  0xc7   :  { %v763_v40 = vadd.f32 %v762_v35, %v2843_v13 }
  0xc9   :  { %2176 = vmatmul.msk.bf16.gmra.mxu0 %vm632_vm1, %v2464_v19  ;;  %v910_v54 = vmax.f32 %v763_v40, 0.0  ;;  %v1080_v40 = vld [vmem:[%s3944_s4 + $0x290] sm:$0xff] }
  0xca   :  { %1136 = vperm.xlu1 %2560, %v1070_v37   ;;  %1231 = vperm.xlu0 %2559, %v1089_v38   ;;  %v3072_v37 = vpop.permute.xlu2 %354 }
  0xcc   :  { %v2995_v41 = vpop.permute.xlu1 %454  ;;  %v2997_v42 = vpop.permute.xlu0 %359  ;;  %1141 = vperm.xlu2 %2561, %v1071_v39   ;;  %v1081_v39 = vld [vmem:[%s3944_s4 + $0x298] sm:$0xff] }
  0xce   :  { %v764_v43 = vpop.f32.mrf.mxu0 }
  0xcf   :  { %v765_v44 = vadd.f32 %v764_v43, %v2841_v12  ;;  %v2465_v12 = vld [vmem:[%s3941_s1 + $0x68] sm:$0xff]  ;;  %v1062_v43 = vld [vmem:[%s3944_s4 + $0x200] sm:$0xff] }
  0xd1   :  { %v911_v13 = vmax.f32 %v765_v44, 0.0  ;;  %v3085_v44 = vpop.f32.mrf.mxu3 }
  0xd2   :  { %1221 = vperm.xlu1 %2560, %v1087_v45   ;;  %1216 = vperm.xlu0 %2559, %v1086_v46   ;;  %v2467_v45 = vld [vmem:[%s3941_s1 + $0x78] sm:$0xff] }
  0xd3   :  { %v3011_v56 = vpack.c.bf16 %v911_v13, %v910_v54  ;;  %v1078_v13 = vld [vmem:[%s3944_s4 + $0x280] sm:$0xff] }
  0xd4   :  { %v3016_v57 = vpop.permute.xlu1 %269  ;;  %v3018_v58 = vpop.permute.xlu0 %264  ;;  %1126 = vperm.xlu2 %2561, %v1068_v55   ;;  %v1063_v55 = vld [vmem:[%s3944_s4 + $0x208] sm:$0xff] }
  0xd6   :  { %v3020_v0 = vpop.f32.mrf.mxu0 }
  0xd9   :  { %2177 = vmatmul.msk.bf16.gmra.mxu0 %vm632_vm1, %v2465_v12  ;;  %v3099_v12 = vpop.permute.xlu2 %459 }
  0xda   :  { %1206 = vperm.xlu1 %2560, %v1084_v1   ;;  %1131 = vperm.xlu0 %2559, %v1069_v3   ;;  %v1079_v3 = vld [vmem:[%s3944_s4 + $0x288] sm:$0xff] }
  0xdc   :  { %v3034_v8 = vpop.permute.xlu1 %444  ;;  %v3036_v9 = vpop.permute.xlu0 %349  ;;  %1211 = vperm.xlu2 %2561, %v1085_v6  }
  0xdd   :  { %v3106_v6 = vpop.f32.mrf.mxu3 }
  0xde   :  { %v769_v10 = vpop.f32.mrf.mxu0 }
  0xe2   :  { %1121 = vperm.xlu1 %2560, %v1067_v2   ;;  %1116 = vperm.xlu0 %2559, %v1066_v16  }
  0xe4   :  { %v3054_v24 = vpop.permute.xlu0 %254  ;;  %1196 = vperm.xlu2 %2561, %v1082_v18   ;;  %v3056_v25 = vpop.permute.xlu1 %259 }
  0xe6   :  { %v772_v26 = vpop.f32.mrf.mxu0 }
  0xe9   :  { %2178 = vmatmul.msk.bf16.gmra.mxu0 %vm632_vm1, %v2466_v20 }
  0xea   :  { %1106 = vperm.xlu1 %2560, %v1064_v27   ;;  %1201 = vperm.xlu0 %2559, %v1083_v28   ;;  %v1979_v28 = vld [vmem:[%s3944_s4 + $0x300] sm:$0xf] }
  0xec   :  { %v3070_v19 = vpop.permute.xlu0 %339  ;;  %1111 = vperm.xlu2 %2561, %v1065_v30   ;;  %v3074_v38 = vpop.permute.xlu1 %434  ;;  %v773_v30 = vadd.f32 %v772_v26, %v2807_v63  ;;  %v768_v63 = vadd.f32 %v3020_v0, %v2761_v47 }
  0xee   :  { %v774_v35 = vpop.f32.mrf.mxu0  ;;  %v914_v26 = vmax.f32 %v773_v30, 0.0 }
  0xef   :  { %v775_v18 = vadd.f32 %v774_v35, %v2823_v5  ;;  %v2468_v35 = vld [vmem:[%s3941_s1 + $0x80] sm:$0xff] }
  0xf2   :  { %1191 = vperm.xlu1 %2560, %v1081_v39   ;;  %1186 = vperm.xlu0 %2559, %v1080_v40  }
  0xf4   :  { %1096 = vperm.xlu2 %2561, %v1062_v43   ;;  %v3090_v46 = vpop.permute.xlu0 %244  ;;  %v3101_v1 = vpop.permute.xlu1 %249 }
  0xf5   :  { %v3117_v43 = vpop.f32.mrf.mxu3 }
  0xf6   :  { %v777_v54 = vpop.f32.mrf.mxu0 }
  0xf7   :  { %v778_v2 = vadd.f32 %v777_v54, %v2805_v62  ;;  %v770_v62 = vadd.f32 %v769_v10, %v2775_v52  ;;  %v915_v54 = vmax.f32 %v775_v18, 0.0  ;;  %v912_v52 = vmax.f32 %v768_v63, 0.0  ;;  %v2198_v63 = vld [vmem:[%s3942_s2] sm:$0xf] }
  0xf9   :  { %2179 = vmatmul.msk.bf16.gmra.mxu0 %vm632_vm1, %v2467_v45  ;;  %v916_v39 = vmax.f32 %v778_v2, 0.0  ;;  %v3119_v45 = vpop.permute.xlu2 %344 }
  0xfa   :  { %1176 = vperm.xlu1 %2560, %v1078_v13   ;;  %1101 = vperm.xlu0 %2559, %v1063_v55   ;;  %v913_v55 = vmax.f32 %v770_v62, 0.0 }
  0xfc   :  { %1181 = vperm.xlu2 %2561, %v1079_v3   ;;  %v3111_v27 = vpop.permute.xlu0 %329  ;;  %v972_v3 = vpack.c.bf16 %v915_v54, %v914_v26  ;;  %v2469_v54 = vld [vmem:[%s3941_s1 + $0x88] sm:$0xff] }
  0xfd   :  { %v3130_v2 = vpop.f32.mrf.mxu3 }
  0xfe   :  { %v779_v16 = vpop.f32.mrf.mxu0 }
  0xff   :  { %v780_v20 = vadd.f32 %v779_v16, %v2821_v4  ;;  %v3122_v4 = vpop.permute.xlu1 %424  ;;  %v971_v16 = vpack.c.bf16 %v913_v55, %v912_v52 }
 0x101   :  { %v917_v40 = vmax.f32 %v780_v20, 0.0  ;;  %v3132_v18 = vpop.permute.xlu2 %449 }
 0x102   :  { %1982 = vperm.xlu0 %2559, %v1979_v28  }
 0x103   :  { %v973_v5 = vpack.c.bf16 %v917_v40, %v916_v39 }
 0x104   :  { %v235_v10 = vpop.permute.xlu0 %234 }
 0x105   :  { %1574 = vmatpush.bf16.msra.mxu1 %v973_v5  ;;  %2549 = vmatpush.bf16.msra.mxu2 %v973_v5  ;;  %v3136_v40 = vpop.f32.mrf.mxu3 }
 0x106   :  { %v782_v13 = vpop.f32.mrf.mxu0 }
 0x107   :  { %v783_v20 = vadd.f32 %v782_v13, %v235_v10  ;;  %v240_v47 = vpop.permute.xlu1 %239  ;;  %v2342_v13 = vld [vmem:[%s3942_s2 + $0x120] sm:$0xf] }
 0x109   :  { %2180 = vmatmul.msk.bf16.gmra.mxu0 %vm632_vm1, %v2468_v35  ;;  %1575 = vmatpush.bf16.msra.mxu1 %v972_v3  ;;  %v918_v30 = vmax.f32 %v783_v20, 0.0  ;;  %v3145_v35 = vpop.permute.xlu2 %334 }
 0x10a   :  { %2550 = vmatpush.bf16.msra.mxu2 %v972_v3 }
 0x10d   :  { %1576 = vmatpush.bf16.msra.mxu1 %v971_v16 }
 0x10e   :  { %2551 = vmatpush.bf16.msra.mxu2 %v971_v16  ;;  %v784_v0 = vpop.f32.mrf.mxu0 }
 0x10f   :  { %v785_v28 = vadd.f32 %v784_v0, %v240_v47  ;;  %v2470_v0 = vld [vmem:[%s3941_s1 + $0x90] sm:$0xff] }
 0x111   :  { %v919_v39 = vmax.f32 %v785_v28, 0.0  ;;  %1577 = vmatpush.bf16.msra.mxu1 %v3011_v56 }
 0x112   :  { %2552 = vmatpush.bf16.msra.mxu2 %v3011_v56  ;;  %v889_v56 = vpop.f32.mrf.mxu3 }
 0x113   :  { %v3138_v62 = vpack.c.bf16 %v919_v39, %v918_v30 }
 0x115   :  { %1578 = vmatpush.bf16.msra.mxu1 %v2973_v31 }
 0x116   :  { %2553 = vmatpush.bf16.msra.mxu2 %v2973_v31  ;;  %v787_v5 = vpop.f32.mrf.mxu0  ;;  %v2486_v31 = vld [vmem:[%s3942_s2 + $0xc] sm:$0xf0] }
 0x117   :  { %v788_v26 = vadd.f32 %v787_v5, %v3090_v46  ;;  %v2199_v46 = vor.u32 %v2486_v31, %v2198_v63  ;;  %v2358_v5 = vld [vmem:[%s3942_s2 + $0x140] sm:$0xf]  ;;  %v2526_v63 = vld [vmem:[%s3942_s2 + $0x14c] sm:$0xf0] }
 0x119   :  { %2181 = vmatmul.msk.bf16.gmra.mxu0 %vm632_vm1, %v2469_v54  ;;  %1579 = vmatpush.bf16.msra.mxu1 %v2937_v11  ;;  %v920_v10 = vmax.f32 %v788_v26, 0.0  ;;  %v2490_v54 = vld [vmem:[%s3942_s2 + $0x2c] sm:$0xf0] }
 0x11a   :  { %2554 = vmatpush.bf16.msra.mxu2 %v2937_v11  ;;  %v2522_v11 = vld [vmem:[%s3942_s2 + $0x12c] sm:$0xf0]  ;;  %v892_v20 = vpop.f32.mrf.mxu3 }
 0x11b   :  { %v2343_v52 = vor.u32 %v2522_v11, %v2342_v13  ;;  %v2359_v11 = vor.u32 %v2526_v63, %v2358_v5  ;;  %v2230_v63 = vld [vmem:[%s3942_s2 + $0x40] sm:$0xf] }
 0x11d   :  { %1580 = vmatpush.bf16.msra.mxu1 %v2900_v49 }
 0x11e   :  { %2555 = vmatpush.bf16.msra.mxu2 %v2900_v49  ;;  %v789_v55 = vpop.f32.mrf.mxu0  ;;  %v440_v49 = vpop.permute.xlu2 %439 }
 0x11f   :  { %v790_v3 = vadd.f32 %v789_v55, %v3101_v1 }
 0x121   :  { %v921_v16 = vmax.f32 %v790_v3, 0.0  ;;  %1581 = vmatpush.bf16.msra.mxu1 %v2898_v48 }
 0x122   :  { %2556 = vmatpush.bf16.msra.mxu2 %v2898_v48  ;;  %v894_v1 = vpop.f32.mrf.mxu3  ;;  %v2214_v48 = vld [vmem:[%s3942_s2 + $0x20] sm:$0xf] }
 0x123   :  { %v3168_v47 = vpack.c.bf16 %v921_v16, %v920_v10  ;;  %v2215_v13 = vor.u32 %v2490_v54, %v2214_v48  ;;  %v893_v48 = vadd.f32 %v892_v20, %v2995_v41  ;;  %v2530_v41 = vld [vmem:[%s3942_s2 + $0x16c] sm:$0xf0]  ;;  %v890_v20 = vadd.f32 %v889_v56, %v3132_v18 }
 0x124   :  { %1582 = vmatmul.bf16.vlgmr.msra.gmra.mxu1 %v2199_v46 }
 0x125   :  { %1627 = vmatmul.bf16.vlgmr.msra.gmra.mxu2 %v2343_v52  ;;  %v2471_v52 = vld [vmem:[%s3941_s1 + $0x98] sm:$0xff] }
 0x126   :  { %v792_v28 = vpop.f32.mrf.mxu0  ;;  %v3174_v30 = vpop.permute.xlu2 %324 }
 0x127   :  { %v793_v39 = vadd.f32 %v792_v28, %v3054_v24 }
 0x129   :  { %2182 = vmatmul.msk.bf16.gmra.mxu0 %vm632_vm1, %v2470_v0  ;;  %v922_v55 = vmax.f32 %v793_v39, 0.0  ;;  %v895_v39 = vadd.f32 %v894_v1, %v3099_v12 }
 0x12a   :  { %v897_v24 = vpop.f32.mrf.mxu3 }
 0x12b   :  { %v898_v0 = vadd.f32 %v897_v24, %v2959_v23  ;;  %v2494_v23 = vld [vmem:[%s3942_s2 + $0x4c] sm:$0xf0] }
 0x12c   :  { %v2231_v24 = vor.u32 %v2494_v23, %v2230_v63  ;;  %v415_v23 = vpop.permute.xlu1 %414 }
 0x12d   :  { %v964_v54 = vmax.f32 %v898_v0, 0.0  ;;  %v885_v0 = vadd.f32 %v3130_v2, %v440_v49  ;;  %v878_v2 = vadd.f32 %v3085_v44, %v3122_v4  ;;  %v2390_v4 = vld [vmem:[%s3942_s2 + $0x180] sm:$0xf] }
 0x12e   :  { %v794_v26 = vpop.f32.mrf.mxu0  ;;  %v430_v10 = vpop.permute.xlu2 %429 }
 0x12f   :  { %v795_v31 = vadd.f32 %v794_v26, %v3056_v25  ;;  %v3197_v25 = vpop.permute.xlu0 %319  ;;  %v880_v49 = vadd.f32 %v3106_v6, %v430_v10  ;;  %v2498_v6 = vld [vmem:[%s3942_s2 + $0x6c] sm:$0xf0] }
 0x131   :  { %v923_v3 = vmax.f32 %v795_v31, 0.0  ;;  %v2374_v31 = vld [vmem:[%s3942_s2 + $0x160] sm:$0xf] }
 0x132   :  { %v899_v28 = vpop.f32.mrf.mxu3 }
 0x133   :  { %v3190_v46 = vpack.c.bf16 %v923_v3, %v922_v55  ;;  %v900_v5 = vadd.f32 %v899_v28, %v3052_v21  ;;  %v888_v21 = vadd.f32 %v3136_v40, %v3034_v8  ;;  %v963_v55 = vmax.f32 %v895_v39, 0.0 }
 0x134   :  { %1587 = vmatmul.bf16.gmra.mxu1 %v2215_v13  ;;  %v961_v40 = vmax.f32 %v890_v20, 0.0  ;;  %v2246_v20 = vld [vmem:[%s3942_s2 + $0x60] sm:$0xf] }
 0x135   :  { %1632 = vmatmul.bf16.gmra.mxu2 %v2359_v11  ;;  %v965_v12 = vmax.f32 %v900_v5, 0.0  ;;  %v962_v11 = vmax.f32 %v893_v48, 0.0  ;;  %v960_v18 = vmax.f32 %v888_v21, 0.0  ;;  %v2472_v48 = vld [vmem:[%s3941_s1 + $0xa0] sm:$0xff]  ;;  %v957_v21 = vmax.f32 %v880_v49, 0.0 }
 0x136   :  { %v797_v16 = vpop.f32.mrf.mxu0  ;;  %v3219_v3 = vpop.permute.xlu2 %314 }
 0x137   :  { %v798_v26 = vadd.f32 %v797_v16, %v3018_v58  ;;  %v997_v58 = vpack.c.bf16 %v965_v12, %v964_v54  ;;  %v883_v16 = vadd.f32 %v3117_v43, %v3074_v38  ;;  %v3224_v8 = vpop.permute.xlu0 %404  ;;  %v959_v38 = vmax.f32 %v885_v0, 0.0  ;;  %v2262_v0 = vld [vmem:[%s3942_s2 + $0x80] sm:$0xf] }
 0x138   :  { %v995_v54 = vpack.c.bf16 %v961_v40, %v960_v18  ;;  %v956_v12 = vmax.f32 %v878_v2, 0.0  ;;  %v2538_v18 = vld [vmem:[%s3942_s2 + $0x1ac] sm:$0xf0] }
 0x139   :  { %2183 = vmatmul.msk.bf16.gmra.mxu0 %vm632_vm1, %v2471_v52  ;;  %v2375_v52 = vor.u32 %v2530_v41, %v2374_v31  ;;  %v924_v28 = vmax.f32 %v798_v26, 0.0  ;;  %1841 = vmatpush.bf16.msrb.mxu1 %v997_v58  ;;  %v958_v39 = vmax.f32 %v883_v16, 0.0  ;;  %v873_v31 = vadd.f32 %v3044_v17, %v415_v23  ;;  %v2534_v17 = vld [vmem:[%s3942_s2 + $0x18c] sm:$0xf0]  ;;  %v2422_v23 = vld [vmem:[%s3942_s2 + $0x1c0] sm:$0xf] }
 0x13b   :  { %v994_v63 = vpack.c.bf16 %v959_v38, %v958_v39  ;;  %v954_v10 = vmax.f32 %v873_v31, 0.0  ;;  %v2474_v38 = vld [vmem:[%s3941_s1 + $0xb0] sm:$0xff] }
 0x13e   :  { %v799_v1 = vpop.f32.mrf.mxu0  ;;  %v420_v26 = vpop.permute.xlu2 %419 }
 0x13f   :  { %v800_v13 = vadd.f32 %v799_v1, %v3016_v57  ;;  %v996_v57 = vpack.c.bf16 %v963_v55, %v962_v11  ;;  %v875_v41 = vadd.f32 %v3065_v29, %v420_v26  ;;  %v3242_v44 = vpop.permute.xlu0 %399  ;;  %v2247_v11 = vor.u32 %v2498_v6, %v2246_v20  ;;  %v2542_v26 = vld [vmem:[%s3942_s2 + $0x1cc] sm:$0xf0] }
 0x140   :  { %v2391_v55 = vor.u32 %v2534_v17, %v2390_v4  ;;  %v2294_v4 = vld [vmem:[%s3942_s2 + $0xc0] sm:$0xf] }
 0x141   :  { %v925_v5 = vmax.f32 %v800_v13, 0.0  ;;  %1842 = vmatpush.bf16.msrb.mxu1 %v996_v57  ;;  %v955_v1 = vmax.f32 %v875_v41, 0.0  ;;  %v993_v13 = vpack.c.bf16 %v957_v21, %v956_v12  ;;  %v2423_v12 = vor.u32 %v2542_v26, %v2422_v23  ;;  %v2475_v21 = vld [vmem:[%s3941_s1 + $0xb8] sm:$0xff] }
 0x143   :  { %v3226_v56 = vpack.c.bf16 %v925_v5, %v924_v28  ;;  %v992_v58 = vpack.c.bf16 %v955_v1, %v954_v10  ;;  %v2502_v28 = vld [vmem:[%s3942_s2 + $0x8c] sm:$0xf0]  ;;  %v2406_v5 = vld [vmem:[%s3942_s2 + $0x1a0] sm:$0xf] }
 0x144   :  { %1592 = vmatmul.bf16.gmra.mxu1 %v2231_v24  ;;  %v2473_v24 = vld [vmem:[%s3941_s1 + $0xa8] sm:$0xff]  ;;  %v2263_v57 = vor.u32 %v2502_v28, %v2262_v0  ;;  %v2510_v10 = vld [vmem:[%s3942_s2 + $0xcc] sm:$0xf0]  ;;  %v2438_v1 = vld [vmem:[%s3942_s2 + $0x1e0] sm:$0xf] }
 0x145   :  { %1637 = vmatmul.bf16.gmra.mxu2 %v2375_v52  ;;  %1843 = vmatpush.bf16.msrb.mxu1 %v995_v54  ;;  %v2278_v54 = vld [vmem:[%s3942_s2 + $0xa0] sm:$0xf] }
 0x146   :  { %v3231_v43 = vpop.f32.mrf.mxu0 }
 0x147   :  { %v3258_v16 = vpop.permute.xlu0 %1246 }
 0x148   :  { %3946 = vst [vmem:[#allocation5_spill] sm:$0xff] %v3258_v16 }
 0x149   :  { %2184 = vmatmul.msk.bf16.gmra.mxu0 %vm632_vm1, %v2472_v48  ;;  %1844 = vmatpush.bf16.msrb.mxu1 %v994_v63  ;;  %v2407_v48 = vor.u32 %v2538_v18, %v2406_v5  ;;  %v2506_v63 = vld [vmem:[%s3942_s2 + $0xac] sm:$0xf0] }
 0x14a   :  { %v2279_v41 = vor.u32 %v2506_v63, %v2278_v54  ;;  %v2476_v54 = vld [vmem:[%s3941_s1 + $0xc0] sm:$0xff] }
 0x14d   :  { %1845 = vmatpush.bf16.msrb.mxu1 %v993_v13  ;;  %v2546_v13 = vld [vmem:[%s3942_s2 + $0x1ec] sm:$0xf0] }
 0x14e   :  { %v3253_v29 = vpop.f32.mrf.mxu0  ;;  %v2439_v0 = vor.u32 %v2546_v13, %v2438_v1 }
 0x14f   :  { %v3273_v39 = vpop.permute.xlu0 %1161 }
 0x151   :  { %1846 = vmatpush.bf16.msrb.mxu1 %v992_v58 }
 0x154   :  { %1597 = vmatmul.bf16.gmra.mxu1 %v2247_v11 }
 0x155   :  { %1642 = vmatmul.bf16.gmra.mxu2 %v2391_v55 }
 0x156   :  { %v807_v52 = vpop.f32.mrf.mxu0 }
 0x157   :  { %v3279_v49 = vpop.permute.xlu0 %1146 }
 0x159   :  { %2185 = vmatmul.msk.bf16.gmra.mxu0 %vm632_vm1, %v2473_v24 }
 0x15e   :  { %v809_v40 = vpop.f32.mrf.mxu0 }
 0x15f   :  { %v3296_v20 = vpop.permute.xlu0 %1231 }
 0x160   :  { %3947 = vst [vmem:[#allocation6_spill] sm:$0xff] %v3296_v20 }
 0x164   :  { %1602 = vmatmul.bf16.gmra.mxu1 %v2263_v57  ;;  %v810_v57 = vadd.f32 %v809_v40, %v2942_v14  ;;  %v803_v14 = vadd.f32 %v3231_v43, %v2980_v33 }
 0x165   :  { %1647 = vmatmul.bf16.gmra.mxu2 %v2407_v48 }
 0x166   :  { %v812_v2 = vpop.f32.mrf.mxu0 }
 0x167   :  { %v3312_v55 = vpop.permute.xlu0 %1216  ;;  %v813_v28 = vadd.f32 %v812_v2, %v2982_v36  ;;  %v805_v36 = vadd.f32 %v3253_v29, %v2978_v32  ;;  %v929_v2 = vmax.f32 %v810_v57, 0.0  ;;  %v2310_v32 = vld [vmem:[%s3942_s2 + $0xe0] sm:$0xf]  ;;  %v2514_v29 = vld [vmem:[%s3942_s2 + $0xec] sm:$0xf0] }
 0x169   :  { %2186 = vmatmul.msk.bf16.gmra.mxu0 %vm632_vm1, %v2474_v38  ;;  %v930_v63 = vmax.f32 %v813_v28, 0.0 }
 0x16e   :  { %v814_v31 = vpop.f32.mrf.mxu0 }
 0x16f   :  { %v815_v58 = vadd.f32 %v814_v31, %v2921_v61  ;;  %v808_v61 = vadd.f32 %v807_v52, %v2944_v15  ;;  %v3327_v40 = vpop.permute.xlu0 %1131  ;;  %v927_v31 = vmax.f32 %v805_v36, 0.0  ;;  %v926_v15 = vmax.f32 %v803_v14, 0.0 }
 0x171   :  { %v931_v48 = vmax.f32 %v815_v58, 0.0  ;;  %v928_v26 = vmax.f32 %v808_v61, 0.0  ;;  %v978_v43 = vpack.c.bf16 %v927_v31, %v926_v15  ;;  %v2518_v58 = vld [vmem:[%s3942_s2 + $0x10c] sm:$0xf0]  ;;  %v2216_v61 = vld [vmem:[%s3942_s2 + $0x30] sm:$0xf0] }
 0x173   :  { %v980_v23 = vpack.c.bf16 %v931_v48, %v930_v63 }
 0x174   :  { %1607 = vmatmul.bf16.gmra.mxu1 %v2279_v41  ;;  %v979_v41 = vpack.c.bf16 %v929_v2, %v928_v26 }
 0x175   :  { %1652 = vmatmul.bf16.gmra.mxu2 %v2423_v12 }
 0x176   :  { %v817_v6 = vpop.f32.mrf.mxu0 }
 0x177   :  { %v818_v17 = vadd.f32 %v817_v6, %v2883_v34  ;;  %v2295_v34 = vor.u32 %v2510_v10, %v2294_v4  ;;  %v2477_v10 = vld [vmem:[%s3941_s1 + $0xc8] sm:$0xff]  ;;  %s2027_s1 = sshll.u32 %s3945_s5, 4  ;;  %s2028_s1 = int_to_ptr.hbm [resolvable:$true] %s2027_s1 }
 0x179   :  { %2187 = vmatmul.msk.bf16.gmra.mxu0 %vm632_vm1, %v2475_v21  ;;  %v932_v5 = vmax.f32 %v818_v17, 0.0  ;;  %v2311_v21 = vor.u32 %v2514_v29, %v2310_v32  ;;  %v3337_v17 = vpop.permute.xlu0 %1116 }
 0x17e   :  { %v819_v11 = vpop.f32.mrf.mxu0 }
 0x17f   :  { %v820_v24 = vadd.f32 %v819_v11, %v2957_v22 }
 0x181   :  { %v933_v18 = vmax.f32 %v820_v24, 0.0  ;;  %v3350_v13 = vpop.permute.xlu0 %1201 }
 0x183   :  { %v981_v38 = vpack.c.bf16 %v933_v18, %v932_v5 }
 0x184   :  { %1612 = vmatmul.bf16.gmra.mxu1 %v2295_v34 }
 0x185   :  { %1657 = vmatmul.bf16.gmra.mxu2 %v2439_v0 }
 0x186   :  { %1663 = vmatpush.bf16.msrb.mxu2 %v981_v38  ;;  %v822_v22 = vpop.f32.mrf.mxu0 }
 0x187   :  { %v823_v52 = vadd.f32 %v822_v22, %v3219_v3 }
 0x189   :  { %2188 = vmatmul.msk.bf16.gmra.mxu0 %vm632_vm1, %v2476_v54  ;;  %v934_v6 = vmax.f32 %v823_v52, 0.0  ;;  %v1187_v57 = vpop.permute.xlu0 %1186 }
 0x18a   :  { %1664 = vmatpush.bf16.msrb.mxu2 %v980_v23 }
 0x18e   :  { %1665 = vmatpush.bf16.msrb.mxu2 %v979_v41  ;;  %v824_v12 = vpop.f32.mrf.mxu0  ;;  %v2492_v41 = vld [vmem:[%s3942_s2 + $0x44] sm:$0xf] }
 0x18f   :  { %v825_v33 = vadd.f32 %v824_v12, %v3197_v25  ;;  %v2326_v25 = vld [vmem:[%s3942_s2 + $0x100] sm:$0xf]  ;;  %v3393_v12 = vpop.permute.xlu2 %394 }
 0x190   :  { %v2327_v0 = vor.u32 %v2518_v58, %v2326_v25 }
 0x191   :  { %v935_v4 = vmax.f32 %v825_v33, 0.0 }
 0x192   :  { %1666 = vmatpush.bf16.msrb.mxu2 %v978_v43 }
 0x193   :  { %v3339_v3 = vpack.c.bf16 %v935_v4, %v934_v6 }
 0x194   :  { %1617 = vmatmul.bf16.gmra.mxu1 %v2311_v21 }
 0x196   :  { %1667 = vmatpush.bf16.msrb.mxu2 %v3226_v56  ;;  %v827_v1 = vpop.f32.mrf.mxu0  ;;  %v2484_v56 = vld [vmem:[%s3942_s2 + $0x4] sm:$0xf] }
 0x197   :  { %v828_v11 = vadd.f32 %v827_v1, %v3174_v30  ;;  %v3399_v4 = vpop.permute.xlu2 %1171 }
 0x199   :  { %2189 = vmatmul.msk.bf16.gmra.mxu0 %vm632_vm1, %v2477_v10  ;;  %v936_v30 = vmax.f32 %v828_v11, 0.0  ;;  %v2496_v10 = vld [vmem:[%s3942_s2 + $0x64] sm:$0xf] }
 0x19a   :  { %1668 = vmatpush.bf16.msrb.mxu2 %v3190_v46  ;;  %v2200_v46 = vld [vmem:[%s3942_s2 + $0x10] sm:$0xf0] }
 0x19b   :  { %v2203_v28 = vor.u32 %v2484_v56, %v2200_v46 }
 0x19e   :  { %1669 = vmatpush.bf16.msrb.mxu2 %v3168_v47  ;;  %v829_v24 = vpop.f32.mrf.mxu0 }
 0x19f   :  { %v830_v34 = vadd.f32 %v829_v24, %v3111_v27  ;;  %v2488_v27 = vld [vmem:[%s3942_s2 + $0x24] sm:$0xf]  ;;  %v3409_v58 = vpop.permute.xlu2 %1156  ;;  %v3413_v24 = vpop.permute.xlu1 %409 }
 0x1a0   :  { %v2219_v36 = vor.u32 %v2488_v27, %v2216_v61  ;;  %v2504_v61 = vld [vmem:[%s3942_s2 + $0xa4] sm:$0xf] }
 0x1a1   :  { %v937_v5 = vmax.f32 %v830_v34, 0.0  ;;  %v2500_v34 = vld [vmem:[%s3942_s2 + $0x84] sm:$0xf] }
 0x1a2   :  { %1670 = vmatpush.bf16.msrb.mxu2 %v3138_v62 }
 0x1a3   :  { %v3365_v47 = vpack.c.bf16 %v937_v5, %v936_v30 }
 0x1a4   :  { %1622 = vmatmul.bf16.gmra.mxu1 %v2327_v0  ;;  %v2264_v0 = vld [vmem:[%s3942_s2 + $0x90] sm:$0xf0] }
 0x1a5   :  { %1671 = vmatmul.bf16.vlgmr.msrb.gmra.mxu2 %v2203_v28  ;;  %v2267_v5 = vor.u32 %v2500_v34, %v2264_v0 }
 0x1a6   :  { %v832_v18 = vpop.f32.mrf.mxu0 }
 0x1a7   :  { %v833_v54 = vadd.f32 %v832_v18, %v3145_v35  ;;  %v3421_v30 = vpop.permute.xlu2 %1241 }
 0x1a8   :  { %v1628_v48 = vpop.f32.mrf.mxu2  ;;  %3949 = vst [vmem:[#allocation8_spill] sm:$0xff] %v3421_v30 }
 0x1a9   :  { %v3367_v38 = vadd.f32 %v1628_v48, %v1187_v57  ;;  %v938_v2 = vmax.f32 %v833_v54, 0.0  ;;  %v3425_v57 = vpop.permute.xlu1 %1166 }
 0x1ae   :  { %v834_v62 = vpop.f32.mrf.mxu0 }
 0x1af   :  { %v835_v63 = vadd.f32 %v834_v62, %v3070_v19  ;;  %v2232_v19 = vld [vmem:[%s3942_s2 + $0x50] sm:$0xf0]  ;;  %v3427_v54 = vpop.permute.xlu2 %1226 }
 0x1b0   :  { %v3377_v22 = vpop.f32.mrf.mxu2  ;;  %v2235_v29 = vor.u32 %v2492_v41, %v2232_v19  ;;  %3951 = vst [vmem:[#allocation10_spill] sm:$0xff] %v3427_v54  ;;  %v2280_v62 = vld [vmem:[%s3942_s2 + $0xb0] sm:$0xf0] }
 0x1b1   :  { %v939_v23 = vmax.f32 %v835_v63, 0.0 }
 0x1b3   :  { %v3379_v14 = vpack.c.bf16 %v939_v23, %v938_v2  ;;  %v2283_v2 = vor.u32 %v2504_v61, %v2280_v62 }
 0x1b5   :  { %1676 = vmatmul.bf16.gmra.mxu2 %v2219_v36  ;;  %v3437_v36 = vpop.permute.xlu1 %1251 }
 0x1b6   :  { %v837_v35 = vpop.f32.mrf.mxu0  ;;  %3953 = vst [vmem:[#allocation12_spill] sm:$0xff] %v3437_v36 }
 0x1b7   :  { %v838_v31 = vadd.f32 %v837_v35, %v3119_v45  ;;  %v3439_v23 = vpop.permute.xlu2 %1141 }
 0x1b8   :  { %v3381_v26 = vpop.f32.mrf.mxu2 }
 0x1b9   :  { %v940_v33 = vmax.f32 %v838_v31, 0.0  ;;  %v3441_v31 = vpop.f32.mrf.mxu1 }
 0x1bd   :  { %v3445_v19 = vpop.permute.xlu1 %1236 }
 0x1be   :  { %v839_v15 = vpop.f32.mrf.mxu0  ;;  %3955 = vst [vmem:[#allocation14_spill] sm:$0xff] %v3445_v19 }
 0x1bf   :  { %v840_v52 = vadd.f32 %v839_v15, %v3036_v9  ;;  %v2248_v9 = vld [vmem:[%s3942_s2 + $0x70] sm:$0xf0]  ;;  %v3447_v15 = vpop.permute.xlu2 %1126 }
 0x1c0   :  { %v3391_v32 = vpop.f32.mrf.mxu2  ;;  %v2251_v11 = vor.u32 %v2496_v10, %v2248_v9 }
 0x1c1   :  { %v941_v43 = vmax.f32 %v840_v52, 0.0  ;;  %v3458_v34 = vpop.f32.mrf.mxu1 }
 0x1c3   :  { %v3395_v21 = vpack.c.bf16 %v941_v43, %v940_v33  ;;  %v2296_v33 = vld [vmem:[%s3942_s2 + $0xd0] sm:$0xf0] }
 0x1c5   :  { %1681 = vmatmul.bf16.gmra.mxu2 %v2235_v29  ;;  %v2508_v29 = vld [vmem:[%s3942_s2 + $0xc4] sm:$0xf]  ;;  %v3463_v62 = vpop.permute.xlu1 %1151 }
 0x1c6   :  { %v842_v45 = vpop.f32.mrf.mxu0 }
 0x1c8   :  { %v3397_v6 = vpop.f32.mrf.mxu2 }
 0x1ce   :  { %v844_v1 = vpop.f32.mrf.mxu0 }
 0x1d0   :  { %v3407_v25 = vpop.f32.mrf.mxu2 }
 0x1d1   :  { %3948 = vst [vmem:[#allocation7_spill] sm:$0xff] %v3407_v25 }
 0x1d5   :  { %1686 = vmatmul.bf16.gmra.mxu2 %v2251_v11  ;;  %v2299_v11 = vor.u32 %v2508_v29, %v2296_v33  ;;  %v3467_v29 = vpop.permute.xlu2 %1211  ;;  %v843_v33 = vadd.f32 %v842_v45, %v3072_v37  ;;  %v2312_v37 = vld [vmem:[%s3942_s2 + $0xf0] sm:$0xf0] }
 0x1d6   :  { %v847_v56 = vpop.f32.mrf.mxu0  ;;  %3957 = vst [vmem:[#allocation16_spill] sm:$0xff] %v3467_v29  ;;  %v2350_v29 = vld [vmem:[%s3942_s2 + $0x128] sm:$0xf] }
 0x1d8   :  { %v3411_v46 = vpop.f32.mrf.mxu2 }
 0x1de   :  { %v849_v28 = vpop.f32.mrf.mxu0 }
 0x1e0   :  { %v3423_v18 = vpop.f32.mrf.mxu2 }
 0x1e1   :  { %3950 = vst [vmem:[#allocation9_spill] sm:$0xff] %v3423_v18 }
 0x1e5   :  { %1691 = vmatmul.bf16.gmra.mxu2 %v2267_v5 }
 0x1e6   :  { %v852_v48 = vpop.f32.mrf.mxu0 }
 0x1e7   :  { %v853_v0 = vadd.f32 %v852_v48, %v2919_v60  ;;  %v845_v60 = vadd.f32 %v844_v1, %v2997_v42  ;;  %v2512_v42 = vld [vmem:[%s3942_s2 + $0xe4] sm:$0xf] }
 0x1e8   :  { %v3429_v27 = vpop.f32.mrf.mxu2 }
 0x1e9   :  { %3952 = vst [vmem:[#allocation11_spill] sm:$0xff] %v3429_v27 }
 0x1ee   :  { %v854_v63 = vpop.f32.mrf.mxu0 }
 0x1ef   :  { %v855_v10 = vadd.f32 %v854_v63, %v3006_v50  ;;  %v848_v50 = vadd.f32 %v847_v56, %v3032_v7  ;;  %v946_v63 = vmax.f32 %v853_v0, 0.0  ;;  %v3475_v7 = vpop.permute.xlu1 %1136  ;;  %v942_v56 = vmax.f32 %v843_v33, 0.0 }
 0x1f0   :  { %v3443_v41 = vpop.f32.mrf.mxu2 }
 0x1f1   :  { %3954 = vst [vmem:[#allocation13_spill] sm:$0xff] %v3443_v41  ;;  %v2320_v41 = vld [vmem:[%s3942_s2 + $0xf8] sm:$0xf0] }
 0x1f5   :  { %1696 = vmatmul.bf16.gmra.mxu2 %v2283_v2  ;;  %v850_v2 = vadd.f32 %v849_v28, %v2961_v59  ;;  %v943_v59 = vmax.f32 %v845_v60, 0.0  ;;  %v2328_v60 = vld [vmem:[%s3942_s2 + $0x110] sm:$0xf0] }
 0x1f6   :  { %v857_v35 = vpop.f32.mrf.mxu0 }
 0x1f7   :  { %v858_v52 = vadd.f32 %v857_v35, %v2907_v53  ;;  %v947_v35 = vmax.f32 %v855_v10, 0.0  ;;  %v945_v48 = vmax.f32 %v850_v2, 0.0  ;;  %v986_v1 = vpack.c.bf16 %v943_v59, %v942_v56  ;;  %v3490_v2 = vpop.permute.xlu1 %1221 }
 0x1f8   :  { %v3461_v53 = vpop.f32.mrf.mxu2  ;;  %3960 = vst [vmem:[#allocation19_spill] sm:$0xff] %v3490_v2  ;;  %v2304_v2 = vld [vmem:[%s3942_s2 + $0xd8] sm:$0xf0] }
 0x1f9   :  { %v948_v5 = vmax.f32 %v858_v52, 0.0  ;;  %3956 = vst [vmem:[#allocation15_spill] sm:$0xff] %v3461_v53  ;;  %v988_v52 = vpack.c.bf16 %v947_v35, %v946_v63 }
 0x1fe   :  { %v859_v43 = vpop.f32.mrf.mxu0 }
 0x1ff   :  { %v860_v9 = vadd.f32 %v859_v43, %v2905_v51  ;;  %v944_v43 = vmax.f32 %v848_v50, 0.0  ;;  %v2516_v50 = vld [vmem:[%s3942_s2 + $0x104] sm:$0xf] }
 0x200   :  { %v3473_v28 = vpop.f32.mrf.mxu2 }
 0x201   :  { %v949_v61 = vmax.f32 %v860_v9, 0.0  ;;  %v3471_v9 = vpop.f32.mrf.mxu1  ;;  %3958 = vst [vmem:[#allocation17_spill] sm:$0xff] %v3473_v28  ;;  %v987_v10 = vpack.c.bf16 %v945_v48, %v944_v43 }
 0x203   :  { %v989_v18 = vpack.c.bf16 %v949_v61, %v948_v5 }
 0x205   :  { %1701 = vmatmul.bf16.gmra.mxu2 %v2299_v11  ;;  %1752 = vmatpush.bf16.msrb.mxu3 %v989_v18  ;;  %v2315_v18 = vor.u32 %v2512_v42, %v2312_v37  ;;  %v3483_v11 = vpop.permute.xlu2 %1196 }
 0x206   :  { %v862_v51 = vpop.f32.mrf.mxu0 }
 0x207   :  { %v863_v56 = vadd.f32 %v862_v51, %v3393_v12 }
 0x208   :  { %v3487_v5 = vpop.f32.mrf.mxu2 }
 0x209   :  { %1753 = vmatpush.bf16.msrb.mxu3 %v988_v52  ;;  %v3485_v0 = vpop.f32.mrf.mxu1  ;;  %3959 = vst [vmem:[#allocation18_spill] sm:$0xff] %v3487_v5 }
 0x20d   :  { %1754 = vmatpush.bf16.msrb.mxu3 %v987_v10  ;;  %v3493_v35 = vpop.permute.xlu2 %1111  ;;  %v3513_v10 = vpop.permute.xlu1 %1206 }
 0x20e   :  { %v864_v45 = vpop.f32.mrf.mxu0 }
 0x20f   :  { %v865_v33 = vadd.f32 %v864_v45, %v3242_v44  ;;  %v950_v44 = vmax.f32 %v863_v56, 0.0  ;;  %v2208_v45 = vld [vmem:[%s3942_s2 + $0x18] sm:$0xf0] }
 0x210   :  { %v3510_v43 = vpop.f32.mrf.mxu2 }
 0x211   :  { %1755 = vmatpush.bf16.msrb.mxu3 %v986_v1  ;;  %v1593_v52 = vpop.f32.mrf.mxu1  ;;  %3961 = vst [vmem:[#allocation20_spill] sm:$0xff] %v3510_v43  ;;  %v951_v1 = vmax.f32 %v865_v33, 0.0  ;;  %v2491_v33 = vld [vmem:[%s3942_s2 + $0x34] sm:$0xf0] }
 0x215   :  { %1706 = vmatmul.bf16.gmra.mxu2 %v2315_v18  ;;  %1756 = vmatpush.bf16.msrb.mxu3 %v3395_v21  ;;  %v2206_v21 = vld [vmem:[%s3942_s2 + $0x8] sm:$0xf] }
 0x216   :  { %v867_v61 = vpop.f32.mrf.mxu0 }
 0x217   :  { %v868_v63 = vadd.f32 %v867_v61, %v3224_v8  ;;  %v1097_v61 = vpop.permute.xlu2 %1096 }
 0x218   :  { %v1584_v12 = vadd.f32 %v3441_v31, %v1097_v61  ;;  %v2222_v31 = vld [vmem:[%s3942_s2 + $0x28] sm:$0xf] }
 0x219   :  { %1757 = vmatpush.bf16.msrb.mxu3 %v3379_v14  ;;  %v2487_v14 = vld [vmem:[%s3942_s2 + $0x14] sm:$0xf0]  ;;  %v952_v42 = vmax.f32 %v868_v63, 0.0 }
 0x21a   :  { %v2207_v59 = vor.u32 %v2487_v14, %v2206_v21  ;;  %v3528_v21 = vpop.permute.xlu1 %1121  ;;  %v2520_v14 = vld [vmem:[%s3942_s2 + $0x124] sm:$0xf] }
 0x21d   :  { %1758 = vmatpush.bf16.msrb.mxu3 %v3365_v47  ;;  %v2331_v47 = vor.u32 %v2516_v50, %v2328_v60  ;;  %v990_v50 = vpack.c.bf16 %v951_v1, %v950_v44  ;;  %v3526_v60 = vpop.f32.mrf.mxu1  ;;  %v2224_v1 = vld [vmem:[%s3942_s2 + $0x38] sm:$0xf0] }
 0x21e   :  { %v869_v48 = vpop.f32.mrf.mxu0 }
 0x21f   :  { %v870_v8 = vadd.f32 %v869_v48, %v3413_v24  ;;  %v2485_v24 = vld [vmem:[%s3942_s2 + $0xc] sm:$0xf]  ;;  %v2344_v48 = vld [vmem:[%s3942_s2 + $0x130] sm:$0xf0] }
 0x220   :  { %v2211_v63 = vor.u32 %v2485_v24, %v2208_v45  ;;  %v2524_v45 = vld [vmem:[%s3942_s2 + $0x144] sm:$0xf] }
 0x221   :  { %v953_v37 = vmax.f32 %v870_v8, 0.0  ;;  %1759 = vmatpush.bf16.msrb.mxu3 %v3339_v3 }
 0x223   :  { %v991_v18 = vpack.c.bf16 %v953_v37, %v952_v42  ;;  %v1107_v42 = vpop.permute.xlu1 %1106  ;;  %v2489_v37 = vld [vmem:[%s3942_s2 + $0x2c] sm:$0xf] }
 0x224   :  { %1760 = vmatmul.bf16.vlgmr.msrb.gmra.mxu3 %v2207_v59  ;;  %v2223_v59 = vor.u32 %v2491_v33, %v2222_v31  ;;  %v2227_v24 = vor.u32 %v2489_v37, %v2224_v1  ;;  %v2493_v31 = vld [vmem:[%s3942_s2 + $0x4c] sm:$0xf]  ;;  %v2240_v33 = vld [vmem:[%s3942_s2 + $0x58] sm:$0xf0] }
 0x225   :  { %1711 = vmatmul.bf16.gmra.mxu2 %v2331_v47  ;;  %1847 = vmatpush.bf16.msrb.mxu1 %v991_v18  ;;  %v2347_v47 = vor.u32 %v2520_v14, %v2344_v48  ;;  %v1598_v56 = vpop.f32.mrf.mxu1  ;;  %v1589_v18 = vadd.f32 %v3471_v9, %v1107_v42  ;;  %v2495_v9 = vld [vmem:[%s3942_s2 + $0x54] sm:$0xf0]  ;;  %v2243_v1 = vor.u32 %v2493_v31, %v2240_v33 }
 0x228   :  { %v1672_v51 = vpop.f32.mrf.mxu2 }
 0x229   :  { %v3524_v3 = vadd.f32 %v1672_v51, %v1584_v12  ;;  %1848 = vmatpush.bf16.msrb.mxu1 %v990_v50  ;;  %v2360_v51 = vld [vmem:[%s3942_s2 + $0x150] sm:$0xf0]  ;;  %v2238_v50 = vld [vmem:[%s3942_s2 + $0x48] sm:$0xf] }
 0x22a   :  { %v2363_v14 = vor.u32 %v2524_v45, %v2360_v51  ;;  %v2239_v48 = vor.u32 %v2495_v9, %v2238_v50  ;;  %v2497_v9 = vld [vmem:[%s3942_s2 + $0x6c] sm:$0xf] }
 0x22b   :  { %v3704_v53 = vpop.permute.xlu1 %1191 }
 0x22c   :  { %1849 = vmatmul.bf16.vlgmr.msrb.gmra.mxu1 %v2211_v63 }
 0x22d   :  { %v3556_v12 = vpop.f32.mrf.mxu1 }
 0x230   :  { %v3542_v8 = vpop.f32.mrf.mxu2 }
 0x234   :  { %1765 = vmatmul.bf16.gmra.mxu3 %v2223_v59 }
 0x235   :  { %1716 = vmatmul.bf16.gmra.mxu2 %v2347_v47  ;;  %v1594_v47 = vadd.f32 %v1593_v52, %v3337_v17  ;;  %v1603_v59 = vpop.f32.mrf.mxu1  ;;  %v2499_v17 = vld [vmem:[%s3942_s2 + $0x74] sm:$0xf0] }
 0x238   :  { %v1677_v61 = vpop.f32.mrf.mxu2 }
 0x239   :  { %v3551_v44 = vadd.f32 %v1677_v61, %v1589_v18  ;;  %v2528_v18 = vld [vmem:[%s3942_s2 + $0x164] sm:$0xf]  ;;  %v2376_v61 = vld [vmem:[%s3942_s2 + $0x170] sm:$0xf0] }
 0x23a   :  { %v2379_v45 = vor.u32 %v2528_v18, %v2376_v61  ;;  %v2392_v18 = vld [vmem:[%s3942_s2 + $0x190] sm:$0xf0]  ;;  %v2270_v61 = vld [vmem:[%s3942_s2 + $0x88] sm:$0xf] }
 0x23c   :  { %1854 = vmatmul.bf16.gmra.mxu1 %v2227_v24  ;;  %v2254_v24 = vld [vmem:[%s3942_s2 + $0x68] sm:$0xf] }
 0x23d   :  { %v2255_v51 = vor.u32 %v2499_v17, %v2254_v24  ;;  %v3592_v50 = vpop.f32.mrf.mxu1 }
 0x240   :  { %v3567_v63 = vpop.f32.mrf.mxu2 }
 0x244   :  { %1770 = vmatmul.bf16.gmra.mxu3 %v2239_v48  ;;  %v1599_v48 = vadd.f32 %v1598_v56, %v3447_v15  ;;  %v2503_v15 = vld [vmem:[%s3942_s2 + $0x94] sm:$0xf0] }
 0x245   :  { %1721 = vmatmul.bf16.gmra.mxu2 %v2363_v14  ;;  %v2256_v14 = vld [vmem:[%s3942_s2 + $0x78] sm:$0xf0]  ;;  %v2271_v17 = vor.u32 %v2503_v15, %v2270_v61  ;;  %v2286_v61 = vld [vmem:[%s3942_s2 + $0xa8] sm:$0xf] }
 0x248   :  { %v1682_v42 = vpop.f32.mrf.mxu2 }
 0x249   :  { %v3576_v37 = vadd.f32 %v1682_v42, %v1594_v47  ;;  %v2259_v47 = vor.u32 %v2497_v9, %v2256_v14  ;;  %v3603_v42 = vpop.f32.mrf.mxu1  ;;  %v2272_v9 = vld [vmem:[%s3942_s2 + $0x98] sm:$0xf0]  ;;  %v1604_v14 = vadd.f32 %v1603_v59, %v3475_v7  ;;  %v2507_v7 = vld [vmem:[%s3942_s2 + $0xb4] sm:$0xf0] }
 0x24c   :  { %1859 = vmatmul.bf16.gmra.mxu1 %v2243_v1  ;;  %v2532_v1 = vld [vmem:[%s3942_s2 + $0x184] sm:$0xf] }
 0x24d   :  { %v2395_v24 = vor.u32 %v2532_v1, %v2392_v18  ;;  %v2536_v1 = vld [vmem:[%s3942_s2 + $0x1a4] sm:$0xf]  ;;  %v2408_v18 = vld [vmem:[%s3942_s2 + $0x1b0] sm:$0xf0] }
 0x250   :  { %v3590_v52 = vpop.f32.mrf.mxu2 }
 0x254   :  { %1775 = vmatmul.bf16.gmra.mxu3 %v2255_v51  ;;  %v2501_v51 = vld [vmem:[%s3942_s2 + $0x8c] sm:$0xf] }
 0x255   :  { %1726 = vmatmul.bf16.gmra.mxu2 %v2379_v45  ;;  %v3619_v45 = vpop.f32.mrf.mxu1 }
 0x258   :  { %v1687_v31 = vpop.f32.mrf.mxu2 }
 0x259   :  { %v3601_v33 = vadd.f32 %v1687_v31, %v1599_v48 }
 0x25c   :  { %1864 = vmatmul.bf16.gmra.mxu1 %v2259_v47  ;;  %v2275_v47 = vor.u32 %v2501_v51, %v2272_v9  ;;  %v2505_v51 = vld [vmem:[%s3942_s2 + $0xac] sm:$0xf]  ;;  %v2288_v9 = vld [vmem:[%s3942_s2 + $0xb8] sm:$0xf0] }
 0x25d   :  { %v3642_v59 = vpop.f32.mrf.mxu1 }
 0x260   :  { %v3617_v56 = vpop.f32.mrf.mxu2 }
 0x264   :  { %1780 = vmatmul.bf16.gmra.mxu3 %v2271_v17  ;;  %v2287_v17 = vor.u32 %v2507_v7, %v2286_v61  ;;  %v2302_v61 = vld [vmem:[%s3942_s2 + $0xc8] sm:$0xf]  ;;  %v2511_v7 = vld [vmem:[%s3942_s2 + $0xd4] sm:$0xf0] }
 0x265   :  { %1731 = vmatmul.bf16.gmra.mxu2 %v2395_v24  ;;  %v2411_v24 = vor.u32 %v2536_v1, %v2408_v18  ;;  %v2540_v1 = vld [vmem:[%s3942_s2 + $0x1c4] sm:$0xf]  ;;  %v2424_v18 = vld [vmem:[%s3942_s2 + $0x1d0] sm:$0xf0] }
 0x268   :  { %v1692_v48 = vpop.f32.mrf.mxu2 }
 0x269   :  { %v3628_v31 = vadd.f32 %v1692_v48, %v1604_v14  ;;  %v2291_v48 = vor.u32 %v2505_v51, %v2288_v9  ;;  %v2303_v51 = vor.u32 %v2511_v7, %v2302_v61  ;;  %v2440_v61 = vld [vmem:[%s3942_s2 + $0x1f0] sm:$0xf0]  ;;  %v2318_v7 = vld [vmem:[%s3942_s2 + $0xe8] sm:$0xf] }
 0x26c   :  { %1869 = vmatmul.bf16.gmra.mxu1 %v2275_v47  ;;  %v3654_v47 = vpop.f32.mrf.mxu1 }
 0x270   :  { %v3644_v15 = vpop.f32.mrf.mxu2 }
 0x274   :  { %1785 = vmatmul.bf16.gmra.mxu3 %v2287_v17  ;;  %v2427_v17 = vor.u32 %v2540_v1, %v2424_v18  ;;  %v3670_v9 = vpop.f32.mrf.mxu1  ;;  %v2544_v1 = vld [vmem:[%s3942_s2 + $0x1e4] sm:$0xf] }
 0x275   :  { %1736 = vmatmul.bf16.gmra.mxu2 %v2411_v24 }
 0x278   :  { %v3652_v14 = vpop.f32.mrf.mxu2 }
 0x27c   :  { %1874 = vmatmul.bf16.gmra.mxu1 %v2291_v48  ;;  %v2509_v48 = vld [vmem:[%s3942_s2 + $0xcc] sm:$0xf]  ;;  %v3683_v18 = vpop.f32.mrf.mxu1 }
 0x27d   :  { %v2307_v54 = vor.u32 %v2509_v48, %v2304_v2  ;;  %v2513_v48 = vld [vmem:[%s3942_s2 + $0xec] sm:$0xf] }
 0x27e   :  { %v2323_v36 = vor.u32 %v2513_v48, %v2320_v41  ;;  %v2517_v41 = vld [vmem:[%s3942_s2 + $0x10c] sm:$0xf] }
 0x280   :  { %v3668_v24 = vpop.f32.mrf.mxu2 }
 0x284   :  { %1790 = vmatmul.bf16.gmra.mxu3 %v2303_v51  ;;  %v1623_v20 = vpop.f32.mrf.mxu1 }
 0x285   :  { %1741 = vmatmul.bf16.gmra.mxu2 %v2427_v17  ;;  %v2515_v17 = vld [vmem:[%s3942_s2 + $0xf4] sm:$0xf0] }
 0x286   :  { %v2319_v51 = vor.u32 %v2515_v17, %v2318_v7 }
 0x288   :  { %v3678_v27 = vpop.f32.mrf.mxu2 }
 0x28c   :  { %1879 = vmatmul.bf16.gmra.mxu1 %v2307_v54  ;;  %v2443_v54 = vor.u32 %v2544_v1, %v2440_v61  ;;  %v2334_v1 = vld [vmem:[%s3942_s2 + $0x108] sm:$0xf]  ;;  %v2519_v61 = vld [vmem:[%s3942_s2 + $0x114] sm:$0xf0] }
 0x28d   :  { %v2335_v17 = vor.u32 %v2519_v61, %v2334_v1 }
 0x290   :  { %v3694_v2 = vpop.f32.mrf.mxu2 }
 0x294   :  { %1795 = vmatmul.bf16.gmra.mxu3 %v2319_v51  ;;  %v1177_v51 = vpop.permute.xlu1 %1176 }
 0x295   :  { %1746 = vmatmul.bf16.gmra.mxu2 %v2443_v54  ;;  %v3714_v54 = vpop.f32.mrf.mxu1  ;;  %v1624_v48 = vadd.f32 %v1623_v20, %v1177_v51  ;;  %v2523_v20 = vld [vmem:[%s3942_s2 + $0x134] sm:$0xf0] }
 0x298   :  { %v3702_v43 = vpop.f32.mrf.mxu2 }
 0x29c   :  { %1884 = vmatmul.bf16.gmra.mxu1 %v2323_v36  ;;  %v2336_v36 = vld [vmem:[%s3942_s2 + $0x118] sm:$0xf0] }
 0x29d   :  { %v2339_v1 = vor.u32 %v2517_v41, %v2336_v36  ;;  %v2351_v41 = vor.u32 %v2523_v20, %v2350_v29 }
 0x2a0   :  { %v3712_v7 = vpop.f32.mrf.mxu2 }
 0x2a4   :  { %1800 = vmatmul.bf16.gmra.mxu3 %v2335_v17  ;;  %v1102_v17 = vpop.permute.xlu0 %1101 }
 0x2a5   :  { %v1586_v25 = vadd.f32 %v3458_v34, %v1102_v17 }
 0x2a7   :  { %v1761_v28 = vpop.f32.mrf.mxu3 }
 0x2a8   :  { %v1712_v19 = vpop.f32.mrf.mxu2  ;;  %v1762_v5 = vadd.f32 %v1761_v28, %v3524_v3 }
 0x2a9   :  { %v3722_v30 = vadd.f32 %v1712_v19, %v1624_v48  ;;  %v1850_v61 = vpop.f32.mrf.mxu1  ;;  %v1675_v19 = vadd.f32 %v3542_v8, %v1586_v25 }
 0x2aa   :  { %v1851_v16 = vadd.f32 %v1850_v61, %v1762_v5  ;;  %v2352_v61 = vld [vmem:[%s3942_s2 + $0x138] sm:$0xf0] }
 0x2ac   :  { %1889 = vmatmul.bf16.gmra.mxu1 %v2339_v1  ;;  %v1930_v48 = vmax.f32 %v1851_v16, 0.0  ;;  %v2521_v1 = vld [vmem:[%s3942_s2 + $0x12c] sm:$0xf] }
 0x2ad   :  { %v2355_v16 = vor.u32 %v2521_v1, %v2352_v61 }
 0x2af   :  { %v1763_v28 = vpop.f32.mrf.mxu3 }
 0x2b0   :  { %v3733_v51 = vpop.f32.mrf.mxu2  ;;  %v1764_v3 = vadd.f32 %v1763_v28, %v1675_v19 }
 0x2b1   :  { %v1852_v5 = vpop.f32.mrf.mxu1 }
 0x2b2   :  { %v1853_v36 = vadd.f32 %v1852_v5, %v1764_v3  ;;  %v1591_v3 = vadd.f32 %v3485_v0, %v3493_v35  ;;  %v2527_v5 = vld [vmem:[%s3942_s2 + $0x154] sm:$0xf0]  ;;  %v2525_v35 = vld [vmem:[%s3942_s2 + $0x14c] sm:$0xf] }
 0x2b4   :  { %v1931_v34 = vmax.f32 %v1853_v36, 0.0  ;;  %1805 = vmatmul.bf16.gmra.mxu3 %v2351_v41  ;;  %v2366_v41 = vld [vmem:[%s3942_s2 + $0x148] sm:$0xf] }
 0x2b6   :  { %v3741_v17 = vpack.c.bf16 %v1931_v34, %v1930_v48  ;;  %v2367_v34 = vor.u32 %v2527_v5, %v2366_v41 }
 0x2b7   :  { %v1766_v8 = vpop.f32.mrf.mxu3 }
 0x2b8   :  { %v1717_v25 = vpop.f32.mrf.mxu2  ;;  %v1767_v29 = vadd.f32 %v1766_v8, %v3551_v44  ;;  %v2368_v8 = vld [vmem:[%s3942_s2 + $0x158] sm:$0xf0] }
 0x2b9   :  { %v3744_v19 = vadd.f32 %v1717_v25, %v3367_v38  ;;  %v1855_v20 = vpop.f32.mrf.mxu1  ;;  %v1680_v38 = vadd.f32 %v3567_v63, %v1591_v3  ;;  %v1634_v63 = vadd.f32 %v3381_v26, %v3483_v11  ;;  %v2371_v41 = vor.u32 %v2525_v35, %v2368_v8  ;;  %v2531_v26 = vld [vmem:[%s3942_s2 + $0x174] sm:$0xf0]  ;;  %v2384_v8 = vld [vmem:[%s3942_s2 + $0x178] sm:$0xf0] }
 0x2ba   :  { %v1856_v28 = vadd.f32 %v1855_v20, %v1767_v29 }
 0x2bc   :  { %1894 = vmatmul.bf16.gmra.mxu1 %v2355_v16  ;;  %v1932_v25 = vmax.f32 %v1856_v28, 0.0 }
 0x2bf   :  { %v1768_v44 = vpop.f32.mrf.mxu3 }
 0x2c0   :  { %v3756_v36 = vpop.f32.mrf.mxu2  ;;  %v1769_v48 = vadd.f32 %v1768_v44, %v1680_v38  ;;  %v1596_v44 = vadd.f32 %v3526_v60, %v3528_v21  ;;  %v2529_v21 = vld [vmem:[%s3942_s2 + $0x16c] sm:$0xf] }
 0x2c1   :  { %v1857_v1 = vpop.f32.mrf.mxu1 }
 0x2c2   :  { %v1858_v61 = vadd.f32 %v1857_v1, %v1769_v48  ;;  %v2382_v48 = vld [vmem:[%s3942_s2 + $0x168] sm:$0xf]  ;;  %v1685_v11 = vadd.f32 %v3590_v52, %v1596_v44  ;;  %v1639_v52 = vadd.f32 %v3397_v6, %v3513_v10  ;;  %v2535_v6 = vld [vmem:[%s3942_s2 + $0x194] sm:$0xf0] }
 0x2c4   :  { %v1933_v0 = vmax.f32 %v1858_v61, 0.0  ;;  %1810 = vmatmul.bf16.gmra.mxu3 %v2367_v34  ;;  %v2383_v61 = vor.u32 %v2531_v26, %v2382_v48  ;;  %v1601_v48 = vadd.f32 %v3556_v12, %v3327_v40  ;;  %v2398_v26 = vld [vmem:[%s3942_s2 + $0x188] sm:$0xf]  ;;  %v2533_v12 = vld [vmem:[%s3942_s2 + $0x18c] sm:$0xf] }
 0x2c6   :  { %v3766_v29 = vpack.c.bf16 %v1933_v0, %v1932_v25  ;;  %v1690_v10 = vadd.f32 %v3617_v56, %v1601_v48  ;;  %v1644_v56 = vadd.f32 %v3411_v46, %v3312_v55  ;;  %v2539_v55 = vld [vmem:[%s3942_s2 + $0x1b4] sm:$0xf0] }
 0x2c7   :  { %v1771_v20 = vpop.f32.mrf.mxu3 }
 0x2c8   :  { %v1722_v16 = vpop.f32.mrf.mxu2  ;;  %v1772_v28 = vadd.f32 %v1771_v20, %v3576_v37 }
 0x2c9   :  { %v3768_v3 = vadd.f32 %v1722_v16, %v1634_v63  ;;  %v1860_v5 = vpop.f32.mrf.mxu1 }
 0x2ca   :  { %v1861_v38 = vadd.f32 %v1860_v5, %v1772_v28  ;;  %v2387_v5 = vor.u32 %v2529_v21, %v2384_v8 }
 0x2cc   :  { %1899 = vmatmul.bf16.gmra.mxu1 %v2371_v41  ;;  %v1934_v35 = vmax.f32 %v1861_v38, 0.0 }
 0x2cf   :  { %v1773_v37 = vpop.f32.mrf.mxu3 }
 0x2d0   :  { %v3780_v34 = vpop.f32.mrf.mxu2  ;;  %v1774_v1 = vadd.f32 %v1773_v37, %v1685_v11 }
 0x2d1   :  { %v1862_v25 = vpop.f32.mrf.mxu1 }
 0x2d2   :  { %v1863_v0 = vadd.f32 %v1862_v25, %v1774_v1  ;;  %v2399_v1 = vor.u32 %v2535_v6, %v2398_v26  ;;  %v2416_v26 = vld [vmem:[%s3942_s2 + $0x1b8] sm:$0xf0] }
 0x2d4   :  { %v1935_v60 = vmax.f32 %v1863_v0, 0.0  ;;  %1815 = vmatmul.bf16.gmra.mxu3 %v2383_v61 }
 0x2d6   :  { %v3790_v63 = vpack.c.bf16 %v1935_v60, %v1934_v35  ;;  %v2400_v35 = vld [vmem:[%s3942_s2 + $0x198] sm:$0xf0] }
 0x2d7   :  { %v1776_v20 = vpop.f32.mrf.mxu3 }
 0x2d8   :  { %v1727_v16 = vpop.f32.mrf.mxu2  ;;  %v1777_v41 = vadd.f32 %v1776_v20, %v3601_v33  ;;  %v2403_v20 = vor.u32 %v2533_v12, %v2400_v35  ;;  %v2432_v12 = vld [vmem:[%s3942_s2 + $0x1d8] sm:$0xf0] }
 0x2d9   :  { %v3792_v28 = vadd.f32 %v1727_v16, %v1639_v52  ;;  %v1865_v38 = vpop.f32.mrf.mxu1 }
 0x2da   :  { %v1866_v44 = vadd.f32 %v1865_v38, %v1777_v41  ;;  %v2414_v38 = vld [vmem:[%s3942_s2 + $0x1a8] sm:$0xf] }
 0x2dc   :  { %1904 = vmatmul.bf16.gmra.mxu1 %v2387_v5  ;;  %v1936_v0 = vmax.f32 %v1866_v44, 0.0  ;;  %v2415_v44 = vor.u32 %v2539_v55, %v2414_v38  ;;  %v2545_v55 = vld [vmem:[%s3942_s2 + $0x1ec] sm:$0xf] }
 0x2df   :  { %v1778_v33 = vpop.f32.mrf.mxu3 }
 0x2e0   :  { %v3804_v11 = vpop.f32.mrf.mxu2  ;;  %v1779_v37 = vadd.f32 %v1778_v33, %v1690_v10 }
 0x2e1   :  { %v1867_v61 = vpop.f32.mrf.mxu1 }
 0x2e2   :  { %v1868_v25 = vadd.f32 %v1867_v61, %v1779_v37  ;;  %v2430_v37 = vld [vmem:[%s3942_s2 + $0x1c8] sm:$0xf] }
 0x2e4   :  { %v1937_v40 = vmax.f32 %v1868_v25, 0.0  ;;  %1820 = vmatmul.bf16.gmra.mxu3 %v2399_v1  ;;  %v2543_v1 = vld [vmem:[%s3942_s2 + $0x1d4] sm:$0xf0] }
 0x2e5   :  { %v2431_v25 = vor.u32 %v2543_v1, %v2430_v37  ;;  %v1616_v1 = vadd.f32 %v3654_v47, %v3273_v39 }
 0x2e6   :  { %v3814_v60 = vpack.c.bf16 %v1937_v40, %v1936_v0  ;;  %v2541_v40 = vld [vmem:[%s3942_s2 + $0x1cc] sm:$0xf] }
 0x2e7   :  { %v1781_v8 = vpop.f32.mrf.mxu3 }
 0x2e8   :  { %v1732_v21 = vpop.f32.mrf.mxu2  ;;  %v1782_v16 = vadd.f32 %v1781_v8, %v3628_v31  ;;  %v2537_v31 = vld [vmem:[%s3942_s2 + $0x1ac] sm:$0xf]  ;;  %v2446_v8 = vld [vmem:[%s3942_s2 + $0x1e8] sm:$0xf] }
 0x2e9   :  { %v3816_v52 = vadd.f32 %v1732_v21, %v1644_v56  ;;  %v1870_v41 = vpop.f32.mrf.mxu1  ;;  %v2419_v10 = vor.u32 %v2537_v31, %v2416_v26  ;;  %v2435_v56 = vor.u32 %v2541_v40, %v2432_v12  ;;  %v1619_v26 = vadd.f32 %v3670_v9, %v3425_v57 }
 0x2ea   :  { %v3819_v5 = vadd.f32 %v1870_v41, %v1782_v16  ;;  %v2547_v16 = vld [vmem:[%s3942_s2 + $0x1f4] sm:$0xf0]  ;;  %v1614_v40 = vadd.f32 %v3642_v59, %v3409_v58  ;;  %v1621_v12 = vadd.f32 %v3683_v18, %v3399_v4  ;;  %v1611_v57 = vadd.f32 %v3619_v45, %v3463_v62 }
 0x2eb   :  { %v2447_v41 = vor.u32 %v2547_v16, %v2446_v8  ;;  %v1609_v58 = vadd.f32 %v3603_v42, %v3279_v49 }
 0x2ec   :  { %1909 = vmatmul.bf16.gmra.mxu1 %v2403_v20  ;;  %v1703_v9 = vadd.f32 %v3678_v27, %v1614_v40  ;;  %v1710_v16 = vadd.f32 %v3712_v7, %v1621_v12  ;;  %v1700_v59 = vadd.f32 %v3668_v24, %v1611_v57  ;;  %v1606_v27 = vadd.f32 %v3592_v50, %v3439_v23 }
 0x2ed   :  { %v1698_v45 = vadd.f32 %v3652_v14, %v1609_v58 }
 0x2ef   :  { %v3827_v46 = vpop.f32.mrf.mxu3 }
 0x2f1   :  { %v3829_v48 = vpop.f32.mrf.mxu1 }
 0x2f4   :  { %1825 = vmatmul.bf16.gmra.mxu3 %v2415_v44  ;;  %v2448_v44 = vld [vmem:[%s3942_s2 + $0x1f8] sm:$0xf0] }
 0x2f7   :  { %v1786_v6 = vpop.f32.mrf.mxu3 }
 0x2f9   :  { %v1875_v33 = vpop.f32.mrf.mxu1 }
 0x2fc   :  { %1914 = vmatmul.bf16.gmra.mxu1 %v2419_v10  ;;  %v2451_v10 = vor.u32 %v2545_v55, %v2448_v44  ;;  %v1695_v55 = vadd.f32 %v3644_v15, %v1606_v27  ;;  %v1787_v44 = vadd.f32 %v1786_v6, %v1698_v45 }
 0x2fe   :  { %v1784_v24 = vadd.f32 %v3827_v46, %v1695_v55 }
 0x2ff   :  { %v1788_v61 = vpop.f32.mrf.mxu3 }
 0x300   :  { %v1789_v7 = vadd.f32 %v1788_v61, %v1700_v59  ;;  %v1873_v61 = vadd.f32 %v3829_v48, %v1784_v24 }
 0x301   :  { %v1877_v0 = vpop.f32.mrf.mxu1 }
 0x304   :  { %1830 = vmatmul.bf16.gmra.mxu3 %v2431_v25  ;;  %v1708_v25 = vadd.f32 %v3702_v43, %v1619_v26  ;;  %v1978_v43 = vld [vmem:[%s3943_s3] sm:$0xf]  ;;  %s2591_s3 = smov [#allocation2]  }
 0x305   :  { %1986 = vst [vmem:[#allocation1] ss:$4 sm:$0xff] %v1978_v43  ;;  %s2025_s24 = sshll.u32 %s2591_s3, 4  ;;  %s2026_s24 = int_to_ptr.vmem [resolvable:$true] %s2025_s24 }
 0x307   :  { %v1791_v35 = vpop.f32.mrf.mxu3 }
 0x308   :  { %v1792_v47 = vadd.f32 %v1791_v35, %v1703_v9  ;;  %v1878_v35 = vadd.f32 %v1877_v0, %v1789_v7  ;;  %v1939_v0 = vmax.f32 %v1873_v61, 0.0 }
 0x309   :  { %v1880_v21 = vpop.f32.mrf.mxu1 }
 0x30a   :  { %v1881_v49 = vadd.f32 %v1880_v21, %v1792_v47  ;;  %v1182_v21 = vpop.permute.xlu2 %1181 }
 0x30c   :  { %1919 = vmatmul.bf16.gmra.mxu1 %v2435_v56  ;;  %v1705_v56 = vadd.f32 %v3694_v2, %v1616_v1  ;;  %v1876_v1 = vadd.f32 %v1875_v33, %v1787_v44  ;;  %v1942_v23 = vmax.f32 %v1881_v49, 0.0 }
 0x30e   :  { %v1940_v40 = vmax.f32 %v1876_v1, 0.0 }
 0x30f   :  { %v1793_v20 = vpop.f32.mrf.mxu3 }
 0x310   :  { %v1794_v39 = vadd.f32 %v1793_v20, %v1705_v56  ;;  %v1938_v56 = vmax.f32 %v3819_v5, 0.0  ;;  %v1631_v5 = vadd.f32 %v3377_v22, %v3704_v53 }
 0x311   :  { %v1882_v38 = vpop.f32.mrf.mxu1 }
 0x312   :  { %v1883_v20 = vadd.f32 %v1882_v38, %v1794_v39  ;;  %v1941_v38 = vmax.f32 %v1878_v35, 0.0  ;;  %v1966_v57 = vpack.c.bf16 %v1939_v0, %v1938_v56  ;;  %v3962_v35 = vld [vmem:[#allocation16_spill] sm:$0xff] }
 0x314   :  { %1835 = vmatmul.bf16.gmra.mxu3 %v2447_v41  ;;  %v1943_v26 = vmax.f32 %v1883_v20, 0.0  ;;  %v1967_v12 = vpack.c.bf16 %v1941_v38, %v1940_v40 }
 0x316   :  { %v1968_v15 = vpack.c.bf16 %v1943_v26, %v1942_v23  ;;  %v3963_v26 = vld [vmem:[#allocation7_spill] sm:$0xff] }
 0x317   :  { %v1796_v31 = vpop.f32.mrf.mxu3 }
 0x318   :  { %v1797_v8 = vadd.f32 %v1796_v31, %v1708_v25  ;;  %v1626_v25 = vadd.f32 %v3714_v54, %v1182_v21 }
 0x319   :  { %v1885_v37 = vpop.f32.mrf.mxu1 }
 0x31a   :  { %v1886_v18 = vadd.f32 %v1885_v37, %v1797_v8  ;;  %v1715_v46 = vadd.f32 %v3733_v51, %v1626_v25 }
 0x31c   :  { %1924 = vmatmul.bf16.gmra.mxu1 %v2451_v10  ;;  %v1944_v42 = vmax.f32 %v1886_v18, 0.0 }
 0x31f   :  { %v1798_v4 = vpop.f32.mrf.mxu3 }
 0x320   :  { %v1799_v2 = vadd.f32 %v1798_v4, %v1710_v16  ;;  %v1720_v4 = vadd.f32 %v3756_v36, %v1631_v5  ;;  %v1636_v36 = vadd.f32 %v3391_v32, %v3350_v13  ;;  %v1734_v32 = vpop.f32.mrf.mxu2  ;;  %v3966_v5 = vld [vmem:[#allocation8_spill] sm:$0xff] }
 0x321   :  { %v1887_v62 = vpop.f32.mrf.mxu1 }
 0x322   :  { %v1888_v41 = vadd.f32 %v1887_v62, %v1799_v2 }
 0x324   :  { %v1945_v31 = vmax.f32 %v1888_v41, 0.0 }
 0x326   :  { %v1969_v10 = vpack.c.bf16 %v1945_v31, %v1944_v42 }
 0x327   :  { %v1801_v37 = vpop.f32.mrf.mxu3 }
 0x328   :  { %v1802_v50 = vadd.f32 %v1801_v37, %v3722_v30  ;;  %1991 = vmatpush.bf16.msra.mxu2 %v1969_v10  ;;  %v1641_v10 = vadd.f32 %v3963_v26, %v3962_v35 }
 0x329   :  { %v1890_v14 = vpop.f32.mrf.mxu1 }
 0x32a   :  { %v1891_v6 = vadd.f32 %v1890_v14, %v1802_v50  ;;  %v1730_v13 = vadd.f32 %v3804_v11, %v1641_v10  ;;  %v3976_v10 = vld [vmem:[#allocation19_spill] sm:$0xff] }
 0x32c   :  { %1992 = vmatpush.bf16.msra.mxu2 %v1968_v15  ;;  %v1946_v9 = vmax.f32 %v1891_v6, 0.0 }
 0x32f   :  { %v1803_v33 = vpop.f32.mrf.mxu3 }
 0x330   :  { %v1804_v30 = vadd.f32 %v1803_v33, %v1715_v46  ;;  %1993 = vmatpush.bf16.msra.mxu2 %v1967_v12 }
 0x331   :  { %v1892_v8 = vpop.f32.mrf.mxu1 }
 0x332   :  { %v1893_v48 = vadd.f32 %v1892_v8, %v1804_v30 }
 0x334   :  { %v1947_v16 = vmax.f32 %v1893_v48, 0.0  ;;  %1994 = vmatpush.bf16.msra.mxu2 %v1966_v57 }
 0x336   :  { %v3891_v39 = vpack.c.bf16 %v1947_v16, %v1946_v9 }
 0x337   :  { %v1806_v54 = vpop.f32.mrf.mxu3 }
 0x338   :  { %v1807_v43 = vadd.f32 %v1806_v54, %v3744_v19  ;;  %1995 = vmatpush.bf16.msra.mxu2 %v3814_v60  ;;  %v1987_v19 = vld.sshfl [vmem:[#allocation1] sm:$0xff pattern:$0x73625140] }
 0x339   :  { %v1895_v51 = vpop.f32.mrf.mxu1 }
 0x33a   :  { %v1896_v58 = vadd.f32 %v1895_v51, %v1807_v43  ;;  %v3965_v43 = vld [vmem:[#allocation18_spill] sm:$0xff] }
 0x33c   :  { %1996 = vmatpush.bf16.msra.mxu2 %v3790_v63  ;;  %v1948_v27 = vmax.f32 %v1896_v58, 0.0 }
 0x33f   :  { %v1808_v59 = vpop.f32.mrf.mxu3 }
 0x340   :  { %v1809_v47 = vadd.f32 %v1808_v59, %v1720_v4  ;;  %1997 = vmatpush.bf16.msra.mxu2 %v3766_v29  ;;  %v1725_v29 = vadd.f32 %v3780_v34, %v1636_v36  ;;  %v3967_v4 = vld [vmem:[#allocation17_spill] sm:$0xff]  ;;  %v3972_v36 = vld [vmem:[#allocation6_spill] sm:$0xff] }
 0x341   :  { %v1897_v18 = vpop.f32.mrf.mxu1  ;;  %v1656_v59 = vadd.f32 %v3967_v4, %v3966_v5 }
 0x342   :  { %v1898_v2 = vadd.f32 %v1897_v18, %v1809_v47 }
 0x344   :  { %v1949_v62 = vmax.f32 %v1898_v2, 0.0  ;;  %1998 = vmatpush.bf16.msra.mxu2 %v3741_v17  ;;  %v3968_v2 = vld [vmem:[#allocation14_spill] sm:$0xff] }
 0x346   :  { %v3901_v60 = vpack.c.bf16 %v1949_v62, %v1948_v27  ;;  %v3969_v27 = vld [vmem:[#allocation15_spill] sm:$0xff] }
 0x347   :  { %v1811_v45 = vpop.f32.mrf.mxu3  ;;  %1999 = vmatmul.bf16.vlgmr.msra.gmra.mxu2 %v1987_v19  ;;  %v1654_v62 = vadd.f32 %v3969_v27, %v3968_v2  ;;  %v3970_v19 = vld [vmem:[#allocation12_spill] sm:$0xff] }
 0x348   :  { %v1812_v22 = vadd.f32 %v1811_v45, %v3768_v3  ;;  %v3971_v45 = vld [vmem:[#allocation20_spill] sm:$0xff] }
 0x349   :  { %v1900_v53 = vpop.f32.mrf.mxu1 }
 0x34a   :  { %v1901_v63 = vadd.f32 %v1900_v53, %v1812_v22  ;;  %v1661_v22 = vadd.f32 %v3971_v45, %v3970_v19 }
 0x34c   :  { %v1950_v44 = vmax.f32 %v1901_v63, 0.0 }
 0x34f   :  { %v1813_v7 = vpop.f32.mrf.mxu3 }
 0x350   :  { %v1814_v20 = vadd.f32 %v1813_v7, %v1725_v29  ;;  %v3973_v29 = vld [vmem:[#allocation13_spill] sm:$0xff] }
 0x351   :  { %v1902_v41 = vpop.f32.mrf.mxu1  ;;  %v1651_v7 = vadd.f32 %v3973_v29, %v3972_v36 }
 0x352   :  { %v1903_v55 = vadd.f32 %v1902_v41, %v1814_v20 }
 0x354   :  { %v1951_v17 = vmax.f32 %v1903_v55, 0.0 }
 0x356   :  { %v3907_v49 = vpack.c.bf16 %v1951_v17, %v1950_v44  ;;  %v3974_v44 = vld [vmem:[#allocation10_spill] sm:$0xff]  ;;  %v3975_v17 = vld [vmem:[#allocation11_spill] sm:$0xff] }
 0x357   :  { %v1816_v42 = vpop.f32.mrf.mxu3 }
 0x358   :  { %v1817_v31 = vadd.f32 %v1816_v42, %v3792_v28  ;;  %v1737_v28 = vpop.f32.mrf.mxu2  ;;  %v1649_v42 = vadd.f32 %v3975_v17, %v3974_v44 }
 0x359   :  { %v1905_v24 = vpop.f32.mrf.mxu1 }
 0x35a   :  { %v1906_v3 = vadd.f32 %v1905_v24, %v1817_v31 }
 0x35c   :  { %v1952_v50 = vmax.f32 %v1906_v3, 0.0 }
 0x35f   :  { %v1818_v34 = vpop.f32.mrf.mxu3 }
 0x360   :  { %v1819_v37 = vadd.f32 %v1818_v34, %v1730_v13  ;;  %v1739_v46 = vpop.f32.mrf.mxu2  ;;  %v3977_v13 = vld [vmem:[#allocation9_spill] sm:$0xff] }
 0x361   :  { %v1907_v1 = vpop.f32.mrf.mxu1  ;;  %v1740_v24 = vadd.f32 %v1739_v46, %v1651_v7  ;;  %v1646_v34 = vadd.f32 %v3977_v13, %v3976_v10 }
 0x362   :  { %v1908_v23 = vadd.f32 %v1907_v1, %v1819_v37  ;;  %v1738_v1 = vadd.f32 %v1737_v28, %v1649_v42 }
 0x364   :  { %v1953_v14 = vmax.f32 %v1908_v23, 0.0 }
 0x366   :  { %v3913_v61 = vpack.c.bf16 %v1953_v14, %v1952_v50 }
 0x367   :  { %v1821_v38 = vpop.f32.mrf.mxu3 }
 0x368   :  { %v1822_v15 = vadd.f32 %v1821_v38, %v3816_v52  ;;  %v1742_v12 = vpop.f32.mrf.mxu2  ;;  %v3964_v52 = vld [vmem:[#allocation5_spill] sm:$0xff]  ;;  %v1735_v38 = vadd.f32 %v1734_v32, %v1646_v34 }
 0x369   :  { %v1910_v6 = vpop.f32.mrf.mxu1  ;;  %v1659_v51 = vadd.f32 %v3965_v43, %v3964_v52  ;;  %v1743_v20 = vadd.f32 %v1742_v12, %v1654_v62 }
 0x36a   :  { %v3916_v21 = vadd.f32 %v1910_v6, %v1822_v15 }
 0x36c   :  { %v1954_v32 = vmax.f32 %v3916_v21, 0.0 }
 0x36f   :  { %v1823_v25 = vpop.f32.mrf.mxu3 }
 0x370   :  { %v1744_v30 = vpop.f32.mrf.mxu2 }
 0x371   :  { %v1912_v40 = vpop.f32.mrf.mxu1  ;;  %v1745_v53 = vadd.f32 %v1744_v30, %v1656_v59 }
 0x377   :  { %v1826_v11 = vpop.f32.mrf.mxu3 }
 0x378   :  { %v1747_v9 = vpop.f32.mrf.mxu2  ;;  %v1827_v15 = vadd.f32 %v1826_v11, %v1738_v1 }
 0x379   :  { %v1915_v0 = vpop.f32.mrf.mxu1  ;;  %v1748_v47 = vadd.f32 %v1747_v9, %v1659_v51 }
 0x37f   :  { %v1828_v33 = vpop.f32.mrf.mxu3 }
 0x380   :  { %v1749_v18 = vpop.f32.mrf.mxu2  ;;  %v1829_v23 = vadd.f32 %v1828_v33, %v1740_v24 }
 0x381   :  { %v1917_v56 = vpop.f32.mrf.mxu1  ;;  %v1750_v41 = vadd.f32 %v1749_v18, %v1661_v22 }
 0x382   :  { %v1918_v9 = vadd.f32 %v1917_v56, %v1829_v23  ;;  %v1983_v56 = vpop.permute.xlu0 %1982 }
 0x384   :  { %v1957_v51 = vmax.f32 %v1918_v9, 0.0 }
 0x387   :  { %v1831_v8 = vpop.f32.mrf.mxu3 }
 0x388   :  { %v1832_v3 = vadd.f32 %v1831_v8, %v1743_v20  ;;  %v1916_v8 = vadd.f32 %v1915_v0, %v1827_v15 }
 0x389   :  { %v1920_v57 = vpop.f32.mrf.mxu1 }
 0x38a   :  { %v1921_v6 = vadd.f32 %v1920_v57, %v1832_v3  ;;  %v1956_v5 = vmax.f32 %v1916_v8, 0.0 }
 0x38c   :  { %v1958_v52 = vmax.f32 %v1921_v6, 0.0  ;;  %v1975_v33 = vpack.c.bf16 %v1957_v51, %v1956_v5 }
 0x38f   :  { %v1833_v48 = vpop.f32.mrf.mxu3 }
 0x390   :  { %v1834_v55 = vadd.f32 %v1833_v48, %v1745_v53  ;;  %v1824_v48 = vadd.f32 %v1823_v25, %v1735_v38  ;;  %v1988_v25 = vld.sshfl [vmem:[#allocation1 + $0x8] sm:$0xff pattern:$0x73625140] }
 0x391   :  { %v1922_v16 = vpop.f32.mrf.mxu1 }
 0x392   :  { %v1923_v50 = vadd.f32 %v1922_v16, %v1834_v55  ;;  %v1913_v43 = vadd.f32 %v1912_v40, %v1824_v48 }
 0x394   :  { %v1955_v28 = vmax.f32 %v1913_v43, 0.0 }
 0x396   :  { %v1974_v11 = vpack.c.bf16 %v1955_v28, %v1954_v32 }
 0x397   :  { %v1836_v54 = vpop.f32.mrf.mxu3 }
 0x398   :  { %v1837_v63 = vadd.f32 %v1836_v54, %v1748_v47  ;;  %v1959_v54 = vmax.f32 %v1923_v50, 0.0 }
 0x399   :  { %v1925_v58 = vpop.f32.mrf.mxu1 }
 0x39a   :  { %v1926_v35 = vadd.f32 %v1925_v58, %v1837_v63  ;;  %v1976_v58 = vpack.c.bf16 %v1959_v54, %v1958_v52 }
 0x39c   :  { %v1960_v12 = vmax.f32 %v1926_v35, 0.0 }
 0x39f   :  { %v1838_v31 = vpop.f32.mrf.mxu3 }
 0x3a0   :  { %v1839_v26 = vadd.f32 %v1838_v31, %v1750_v41 }
 0x3a1   :  { %v1927_v37 = vpop.f32.mrf.mxu1 }
 0x3a2   :  { %v1928_v14 = vadd.f32 %v1927_v37, %v1839_v26 }
 0x3a4   :  { %v1961_v30 = vmax.f32 %v1928_v14, 0.0 }
 0x3a6   :  { %v1977_v46 = vpack.c.bf16 %v1961_v30, %v1960_v12 }
 0x3a8   :  { %2004 = vmatpush.bf16.msra.mxu3 %v1977_v46 }
 0x3ac   :  { %2005 = vmatpush.bf16.msra.mxu3 %v1976_v58 }
 0x3b0   :  { %2006 = vmatpush.bf16.msra.mxu3 %v1975_v33 }
 0x3b4   :  { %2007 = vmatpush.bf16.msra.mxu3 %v1974_v11 }
 0x3b8   :  { %2008 = vmatpush.bf16.msra.mxu3 %v3913_v61 }
 0x3bc   :  { %2009 = vmatpush.bf16.msra.mxu3 %v3907_v49 }
 0x3c0   :  { %2010 = vmatpush.bf16.msra.mxu3 %v3901_v60 }
 0x3c4   :  { %2011 = vmatpush.bf16.msra.mxu3 %v3891_v39 }
 0x3c7   :  { %2012 = vmatmul.bf16.vlgmr.msra.gmra.mxu3 %v1988_v25 }
 0x3ca   :  { %v2000_v40 = vpop.f32.mrf.mxu2 }
 0x3cb   :  { %v2001_v57 = vadd.f32 %v2000_v40, %v1983_v56 }
 0x3d2   :  { %v2002_v0 = vpop.f32.mrf.mxu2 }
 0x44a   :  { %v2013_v16 = vpop.f32.mrf.mxu3 }
 0x44b   :  { %v2014_v4 = vadd.f32 %v2013_v16, %v2001_v57 }
 0x44d   :  { %2562 = vtanh.f32 %v2014_v4 }
 0x452   :  { %v2015_v49 = vpop.f32.mrf.mxu3 }
 0x453   :  { %v2563_v39 = vpop.eup %2562 }
 0x454   :  { %2019 = vst.msk [vmem:[#allocation2] sm:$0xf] %vm2018_vm2, %v2563_v39 }
 0x455   :  { %2030 = dma.vmem_to_hbm [thread:$0]  %s2026_s24, 64, %s2028_s1, [#allocation3]  }
 0x456   :  { %2588 = dma.done.wait [#allocation3], 64  }
 0x457   :  { %2589 = vsyncadd [#allocation3], 4294967232 }
 0x458   :  { %2035 = vsyncpa [#allocation3], 1 }

</bundles_post_ra>
